<compile_context>
chip_gen: v6e
topology: v6e:2x2x1
jax: 0.10.0
libtpu: 0.0.40
codegen_flags: <defaults>
</compile_context>

<pallas_src>
import functools

import jax
import jax.numpy as jnp
import numpy as np
from jax.experimental import pallas as pl
from jax.experimental.pallas import tpu as pltpu

LRELU_SLOPE = 0.01       # nn.LeakyReLU default negative_slope (BasicFullyConnectedNet)
INV_LRELU_ALPHA = 0.9    # InvLeakyRelu alpha


def _lrelu(x):
    return jnp.where(x >= 0, x, LRELU_SLOPE * x)


def _inv_lrelu_fwd(x):
    return jnp.where(x >= 0, x, INV_LRELU_ALPHA * x)


def _round_up(x, m):
    return (x + m - 1) // m * m


# ----------------------------------------------------------------------------
# Kernel
# ----------------------------------------------------------------------------
def flow_block_kernel(x0_ref, x1_ref, xc_ref,
                      loc0_ref, scale0_ref, loc1_ref, scale1_ref,
                      w_in_x_ref, w_in_c_ref, b_in_ref,
                      w_hid_ref, b_hid_ref,
                      w_out_s_ref, b_out_s_ref,
                      w_out_t_ref, b_out_t_ref,
                      y_ref, ld_ref,
                      *, depth, fuse):
    """ActNorm + InvLeakyRelu + ConditionalDoubleVectorCouplingBlock (forward).

    fuse=True : s/t MLP pair of each coupling step is fused along the feature
                axis (hidden width 2H, block-diagonal hidden weights) -- only
                used when 2H fits one MXU tile.
    fuse=False: each of the 4 MLPs runs with its own (H-wide) matmul chain.
    """
    f32 = jnp.float32
    bf16 = jnp.bfloat16

    x0 = x0_ref[...]                       # (TB, d_half) f32
    x1 = x1_ref[...]                       # (TB, d_half) f32
    xc_bf = xc_ref[...]                    # (TB, Cc) bf16 (cast in wrapper)

    # ActNorm + InvLeakyRelu: elementwise kept in f32 (v5e has no bf16 VPU).
    h0 = _inv_lrelu_fwd(scale0_ref[...] * (x0 + loc0_ref[...]))
    h1 = _inv_lrelu_fwd(scale1_ref[...] * (x1 + loc1_ref[...]))

    def chain(x_bf, idx):
        """Input + hidden layers of weight slot `idx` (bf16 MXU, f32 accum)."""
        h = (jnp.dot(x_bf, w_in_x_ref[idx], preferred_element_type=f32)
             + jnp.dot(xc_bf, w_in_c_ref[idx], preferred_element_type=f32)
             + b_in_ref[idx])
        h = _lrelu(h)
        for d in range(depth):                                  # static unroll
            h = _lrelu(jnp.dot(h.astype(bf16), w_hid_ref[idx * depth + d],
                               preferred_element_type=f32)
                       + b_hid_ref[idx * depth + d])
        return h.astype(bf16)

    def st_pair(x_app, k):
        """(s, t) of coupling step k."""
        xb = x_app.astype(bf16)
        if fuse:
            hb_s = hb_t = chain(xb, k)          # fused (s_k, t_k) chain, width 2H
        else:
            hb_s = chain(xb, 2 * k)             # s_k MLP, width H
            hb_t = chain(xb, 2 * k + 1)         # t_k MLP, width H
        s = jnp.tanh(jnp.dot(hb_s, w_out_s_ref[k], preferred_element_type=f32)
                     + b_out_s_ref[k])
        t = jnp.dot(hb_t, w_out_t_ref[k], preferred_element_type=f32) + b_out_t_ref[k]
        return s, t

    # Coupling step 0: apply = h0, keep = h1.
    s0, t0 = st_pair(h0, 0)
    x1n = h1 * jnp.exp(s0) + t0
    # Coupling step 1: halves swapped -> apply = x1n, keep = h0.
    s1, t1 = st_pair(x1n, 1)
    x0n = h0 * jnp.exp(s1) + t1

    # Single lane-dense output slab: pre-shuffle result is [x1n, x0n].
    y_ref[...] = jnp.concatenate([x1n, x0n], axis=1)
    # Logdet lane reduction in-kernel (XLU is idle under the MXU work).
    ld_ref[...] = jnp.sum(s0 + s1, axis=1, keepdims=True)


# ----------------------------------------------------------------------------
# Parameters
# ----------------------------------------------------------------------------
def init_params(key, in_channels, cond_channels, hidden_dim, hidden_depth):
    """Raw (reference-layout) parameters: 4 BasicFullyConnectedNets [s0,t0,s1,t1]."""
    assert hidden_depth >= 1
    C, Cc, H, depth = in_channels, cond_channels, hidden_dim, hidden_depth
    d_half = C // 2
    d_in = d_half + Cc
    ks = jax.random.split(key, 8)
    p = {}
    p["loc"] = 0.1 * jax.random.normal(ks[0], (1, C), jnp.float32)
    p["scale"] = 1.0 + 0.1 * jax.random.normal(ks[1], (1, C), jnp.float32)
    p["w_in_raw"] = 0.2 * jax.random.normal(ks[2], (4, d_in, H), jnp.float32)
    p["b_in_raw"] = 0.1 * jax.random.normal(ks[3], (4, 1, H), jnp.float32)
    p["w_hid_raw"] = 0.2 * jax.random.normal(ks[4], (4, depth, H, H), jnp.float32)
    p["b_hid_raw"] = 0.1 * jax.random.normal(ks[5], (4, depth, 1, H), jnp.float32)
    p["w_out_raw"] = 0.2 * jax.random.normal(ks[6], (4, H, d_half), jnp.float32)
    p["b_out_raw"] = 0.1 * jax.random.normal(ks[7], (4, 1, d_half), jnp.float32)
    # Shuffle buffer: static permutation (compile-time constant gather).
    p["shuffle_idx"] = np.random.RandomState(0).permutation(C)
    return p


def prepare_kernel_params(raw, in_channels, cond_channels, hidden_dim,
                          hidden_depth, fuse=None):
    """Kernel-ready parameters (pre-split, bf16 weights, f32 biases).

    fuse=None -> auto: fuse the (s,t) MLP pair only when 2H fits one MXU tile.
    """
    C, Cc, H, depth = in_channels, cond_channels, hidden_dim, hidden_depth
    d_half = C // 2
    if fuse is None:
        fuse = (2 * H) <= 256       # one MXU tile on v6e/v7x (<=128 ideal on v5e)
    bf16 = jnp.bfloat16

    kp = {"fuse": bool(fuse), "depth": depth, "d_half": d_half, "cc": Cc, "c": C,
          "shuffle_idx": raw["shuffle_idx"], "scale_full": raw["scale"]}
    kp["loc0"], kp["loc1"] = raw["loc"][:, :d_half], raw["loc"][:, d_half:]
    kp["scale0"], kp["scale1"] = raw["scale"][:, :d_half], raw["scale"][:, d_half:]

    w_in, b_in = raw["w_in_raw"], raw["b_in_raw"]
    w_hid, b_hid = raw["w_hid_raw"], raw["b_hid_raw"]
    w_out, b_out = raw["w_out_raw"], raw["b_out_raw"]

    if fuse:
        zH = jnp.zeros((H, H), jnp.float32)
        zO = jnp.zeros((H, d_half), jnp.float32)
        w_in_x, w_in_c, b_in_f = [], [], []
        w_hid_f, b_hid_f = [], []
        w_out_s, b_out_s, w_out_t, b_out_t = [], [], [], []
        for k in range(2):                      # coupling step k fuses (s_k, t_k)
            si, ti = 2 * k, 2 * k + 1
            w_in_x.append(jnp.concatenate([w_in[si, :d_half], w_in[ti, :d_half]], 1))
            w_in_c.append(jnp.concatenate([w_in[si, d_half:], w_in[ti, d_half:]], 1))
            b_in_f.append(jnp.concatenate([b_in[si], b_in[ti]], 1))
            for d in range(depth):
                top = jnp.concatenate([w_hid[si, d], zH], 1)
                bot = jnp.concatenate([zH, w_hid[ti, d]], 1)
                w_hid_f.append(jnp.concatenate([top, bot], 0))       # block-diag
                b_hid_f.append(jnp.concatenate([b_hid[si, d], b_hid[ti, d]], 1))
            w_out_s.append(jnp.concatenate([w_out[si], zO], 0))
            w_out_t.append(jnp.concatenate([zO, w_out[ti]], 0))
            b_out_s.append(b_out[si]); b_out_t.append(b_out[ti])
        kp["w_in_x"] = jnp.stack(w_in_x).astype(bf16)      # (2, d_half, 2H)
        kp["w_in_c"] = jnp.stack(w_in_c).astype(bf16)      # (2, Cc, 2H)
        kp["b_in"] = jnp.stack(b_in_f)                     # (2, 1, 2H) f32
        kp["w_hid"] = jnp.stack(w_hid_f).astype(bf16)      # (2*depth, 2H, 2H)
        kp["b_hid"] = jnp.stack(b_hid_f)                   # (2*depth, 1, 2H) f32
        kp["w_out_s"] = jnp.stack(w_out_s).astype(bf16)    # (2, 2H, d_half)
        kp["w_out_t"] = jnp.stack(w_out_t).astype(bf16)
        kp["b_out_s"] = jnp.stack(b_out_s)                 # (2, 1, d_half) f32
        kp["b_out_t"] = jnp.stack(b_out_t)
    else:
        # Per-MLP weights, order [s0, t0, s1, t1]; no wasted MACs / VMEM.
        kp["w_in_x"] = w_in[:, :d_half, :].astype(bf16)    # (4, d_half, H)
        kp["w_in_c"] = w_in[:, d_half:, :].astype(bf16)    # (4, Cc, H)
        kp["b_in"] = b_in                                  # (4, 1, H) f32
        kp["w_hid"] = w_hid.reshape(4 * depth, H, H).astype(bf16)
        kp["b_hid"] = b_hid.reshape(4 * depth, 1, H)
        kp["w_out_s"] = w_out[0::2].astype(bf16)           # (2, H, d_half) s0,s1
        kp["w_out_t"] = w_out[1::2].astype(bf16)           # (2, H, d_half) t0,t1
        kp["b_out_s"] = b_out[0::2]
        kp["b_out_t"] = b_out[1::2]
    return kp


# ----------------------------------------------------------------------------
# Wrapper
# ----------------------------------------------------------------------------
def _choose_vmem_limit(param_bytes, act_bytes):
    try:
        phys = int(pltpu.get_tpu_info().vmem_capacity_bytes)
    except Exception:
        phys = 64 * 1024 * 1024          # conservative: v7x per-TC VMEM
    need = 2 * param_bytes + act_bytes + (8 << 20)
    cap = int(0.75 * phys)               # headroom for Mosaic internal scratch
    return max(32 << 20, min(need, cap))


def flow_block_forward(x, xcond, kp, *, block_b=512):
    B, C, hh, ww = x.shape
    assert hh == 1 and ww == 1, "flat coupling block expects 1x1 spatial dims"
    Cc = xcond.shape[1]
    d_half = C // 2
    fuse, depth = kp["fuse"], kp["depth"]

    x2 = x.reshape(B, C).astype(jnp.float32)
    xc2 = xcond.reshape(B, Cc).astype(jnp.bfloat16)   # matmul operand only

    # Pre-split at the call boundary so no lane slicing happens in-kernel.
    x0 = x2[:, :d_half]
    x1 = x2[:, d_half:]

    # Batch tile: multiple of 16 (bf16 sublane packing); prefer >= 2 grid steps
    # so the 'parallel' batch axis can shard across both v7x TensorCores.
    tb = min(block_b, _round_up(B, 16))
    tb = max(16, _round_up(tb, 16))
    Bp = _round_up(B, tb)
    if Bp // tb < 2 and Bp >= 32:
        tb = _round_up(Bp // 2, 16)
        Bp = _round_up(B, tb)
    pad = Bp - B
    if pad:
        x0 = jnp.pad(x0, ((0, pad), (0, 0)))
        x1 = jnp.pad(x1, ((0, pad), (0, 0)))
        xc2 = jnp.pad(xc2, ((0, pad), (0, 0)))
    grid = (Bp // tb,)

    operands = (x0, x1, xc2,
                kp["loc0"], kp["scale0"], kp["loc1"], kp["scale1"],
                kp["w_in_x"], kp["w_in_c"], kp["b_in"],
                kp["w_hid"], kp["b_hid"],
                kp["w_out_s"], kp["b_out_s"], kp["w_out_t"], kp["b_out_t"])

    param_bytes = sum(int(np.prod(a.shape)) * a.dtype.itemsize for a in operands[3:])
    hid_w = kp["w_hid"].shape[-1]        # 2H (fused) or H (split)
    act_bytes = 2 * tb * (2 * d_half * 4 + Cc * 2 + (C + 1) * 4) + 4 * tb * hid_w * 4
    vmem_limit = _choose_vmem_limit(param_bytes, act_bytes)

    # Advisory cost estimate (each weight matrix is applied once per row).
    weight_elems = sum(int(np.prod(a.shape)) for a in
                       (kp["w_in_x"], kp["w_in_c"], kp["w_hid"],
                        kp["w_out_s"], kp["w_out_t"]))
    cost = pl.CostEstimate(
        flops=int(2 * Bp * weight_elems),
        transcendentals=int(4 * Bp * d_half),              # exp x2 + tanh x2
        bytes_accessed=int(param_bytes + Bp * (2 * d_half * 4 + Cc * 2)
                           + Bp * (C + 1) * 4))

    kernel = functools.partial(flow_block_kernel, depth=depth, fuse=fuse)

    def batch_spec(width):
        return pl.BlockSpec((tb, width), lambda i: (i, 0))

    def const_spec(shape, single_buffer):
        nd = len(shape)
        idx = lambda i: (0,) * nd
        if single_buffer:
            # Grid-invariant parameters: no double buffering (halves param VMEM).
            return pl.BlockSpec(tuple(shape), idx, pipeline_mode=pl.Buffered(1))
        return pl.BlockSpec(tuple(shape), idx)

    out_specs = (pl.BlockSpec((tb, C), lambda i: (i, 0)),
                 pl.BlockSpec((tb, 1), lambda i: (i, 0)))
    # Output kept f32 (downstream flow blocks in the reference stack use f32);
    # could be emitted bf16 to halve output HBM traffic if the consumer allows.
    out_shape = (jax.ShapeDtypeStruct((Bp, C), jnp.float32),
                 jax.ShapeDtypeStruct((Bp, 1), jnp.float32))

    def run(single_buffer):
        in_specs = [batch_spec(d_half), batch_spec(d_half), batch_spec(Cc)]
        in_specs += [const_spec(a.shape, single_buffer) for a in operands[3:]]
        return pl.pallas_call(
            kernel,
            grid=grid,
            in_specs=in_specs,
            out_specs=out_specs,
            out_shape=out_shape,
            cost_estimate=cost,
            compiler_params=pltpu.CompilerParams(
                dimension_semantics=("parallel",),
                vmem_limit_bytes=vmem_limit),
        )(*operands)

    try:
        y_full, ld = run(single_buffer=True)
    except Exception:
        # Fallback for JAX versions without BlockSpec.pipeline_mode support.
        y_full, ld = run(single_buffer=False)

    # Static channel shuffle (compile-time permutation) + logdet assembly.
    h = y_full[:B][:, kp["shuffle_idx"]]
    logdet_actnorm = jnp.sum(jnp.log(jnp.abs(kp["scale_full"])))
    logdet = ld[:B, 0] + logdet_actnorm
    return h.reshape(B, C, 1, 1), logdet


# ----------------------------------------------------------------------------
# Plain-JAX reference (mirrors the PyTorch forward; bf16 matmuls, f32 accum)
# ----------------------------------------------------------------------------
def reference_forward(x, xcond, params, hidden_depth):
    B, C = x.shape[0], x.shape[1]
    d_half = C // 2
    bf16, f32 = jnp.bfloat16, jnp.float32
    h = x.reshape(B, C).astype(f32)
    xc = xcond.reshape(B, -1).astype(f32)

    h = params["scale"] * (h + params["loc"])                       # ActNorm
    logdet = jnp.full((B,), jnp.sum(jnp.log(jnp.abs(params["scale"]))), f32)
    h = jnp.where(h >= 0, h, INV_LRELU_ALPHA * h)                   # InvLeakyRelu

    def dot(a, w):
        return jnp.dot(a.astype(bf16), w.astype(bf16), preferred_element_type=f32)

    def mlp(z, k, use_tanh):
        y = dot(z, params["w_in_raw"][k]) + params["b_in_raw"][k]
        y = jnp.where(y >= 0, y, LRELU_SLOPE * y)
        for d in range(hidden_depth):
            y = dot(y, params["w_hid_raw"][k, d]) + params["b_hid_raw"][k, d]
            y = jnp.where(y >= 0, y, LRELU_SLOPE * y)
        y = dot(y, params["w_out_raw"][k]) + params["b_out_raw"][k]
        return jnp.tanh(y) if use_tanh else y

    for i in range(2):
        if i % 2 != 0:
            h = jnp.concatenate([h[:, d_half:], h[:, :d_half]], axis=1)
        xa, xk = h[:, :d_half], h[:, d_half:]
        ci = jnp.concatenate([xa, xc], axis=1)
        s = mlp(ci, 2 * i, True)
        t = mlp(ci, 2 * i + 1, False)
        xk = xk * jnp.exp(s) + t
        h = jnp.concatenate([xa, xk], axis=1)
        logdet = logdet + jnp.sum(s, axis=1)

    h = h[:, params["shuffle_idx"]]                                 # Shuffle
    return h.reshape(B, C, 1, 1), logdet


if __name__ == "__main__":
    key = jax.random.PRNGKey(0)
    k_x, k_c, k_p = jax.random.split(key, 3)

    B, C, Cc, HID, DEPTH = 32, 8, 4, 32, 2
    x = jax.random.normal(k_x, (B, C, 1, 1), jnp.float32)
    xcond = jax.random.normal(k_c, (B, Cc, 1, 1), jnp.float32)
    raw = init_params(k_p, C, Cc, HID, DEPTH)

    h_ref, ld_ref = reference_forward(x, xcond, raw, DEPTH)

    # Fused s/t path (2H <= 256 here); block_b=16 -> 2 batch tiles -> exercises
    # the pipelined 'parallel' batch grid.
    kp_fused = prepare_kernel_params(raw, C, Cc, HID, DEPTH, fuse=None)
    h1, ld1 = flow_block_forward(x, xcond, kp_fused, block_b=16)
    (h1, ld1) = jax.block_until_ready((h1, ld1))
    np.testing.assert_allclose(np.asarray(h1), np.asarray(h_ref), rtol=5e-3, atol=5e-3)
    np.testing.assert_allclose(np.asarray(ld1), np.asarray(ld_ref), rtol=5e-3, atol=5e-3)

    # Split (un-fused) path -- the one selected automatically when 2H > 256 --
    # forced here at small shapes to check both code paths.
    kp_split = prepare_kernel_params(raw, C, Cc, HID, DEPTH, fuse=False)
    h2, ld2 = flow_block_forward(x, xcond, kp_split, block_b=32)
    (h2, ld2) = jax.block_until_ready((h2, ld2))
    np.testing.assert_allclose(np.asarray(h2), np.asarray(h_ref), rtol=5e-3, atol=5e-3)
    np.testing.assert_allclose(np.asarray(ld2), np.asarray(ld_ref), rtol=5e-3, atol=5e-3)

    print("KERNEL_OK")
</pallas_src>

<mosaic_0001>
module attributes {stable_mosaic.version = 11 : i64} {
  func.func @flow_block_kernel(%arg0: i32, %arg1: memref<16x4xf32, #tpu.memory_space<vmem>>, %arg2: memref<16x4xf32, #tpu.memory_space<vmem>>, %arg3: memref<16x4xbf16, #tpu.memory_space<vmem>>, %arg4: memref<1x4xf32, #tpu.memory_space<vmem>>, %arg5: memref<1x4xf32, #tpu.memory_space<vmem>>, %arg6: memref<1x4xf32, #tpu.memory_space<vmem>>, %arg7: memref<1x4xf32, #tpu.memory_space<vmem>>, %arg8: memref<2x4x64xbf16, #tpu.memory_space<vmem>>, %arg9: memref<2x4x64xbf16, #tpu.memory_space<vmem>>, %arg10: memref<2x1x64xf32, #tpu.memory_space<vmem>>, %arg11: memref<4x64x64xbf16, #tpu.memory_space<vmem>>, %arg12: memref<4x1x64xf32, #tpu.memory_space<vmem>>, %arg13: memref<2x64x4xbf16, #tpu.memory_space<vmem>>, %arg14: memref<2x1x4xf32, #tpu.memory_space<vmem>>, %arg15: memref<2x64x4xbf16, #tpu.memory_space<vmem>>, %arg16: memref<2x1x4xf32, #tpu.memory_space<vmem>>, %arg17: memref<16x8xf32, #tpu.memory_space<vmem>>, %arg18: memref<16x1xf32, #tpu.memory_space<vmem>>) attributes {dimension_semantics = [#tpu.dimension_semantics<parallel>], iteration_bounds = array<i64: 2>, scalar_prefetch = 0 : i64, scratch_operands = 0 : i64, tpu.core_type = #tpu.core_type<tc>, window_params = [{transform_indices = @transform_0, window_bounds = array<i64: 16, 4>}, {transform_indices = @transform_1, window_bounds = array<i64: 16, 4>}, {transform_indices = @transform_2, window_bounds = array<i64: 16, 4>}, {pipeline_mode = #tpu.pipeline_mode<synchronous>, transform_indices = @transform_3, window_bounds = array<i64: 1, 4>}, {pipeline_mode = #tpu.pipeline_mode<synchronous>, transform_indices = @transform_4, window_bounds = array<i64: 1, 4>}, {pipeline_mode = #tpu.pipeline_mode<synchronous>, transform_indices = @transform_5, window_bounds = array<i64: 1, 4>}, {pipeline_mode = #tpu.pipeline_mode<synchronous>, transform_indices = @transform_6, window_bounds = array<i64: 1, 4>}, {pipeline_mode = #tpu.pipeline_mode<synchronous>, transform_indices = @transform_7, window_bounds = array<i64: 2, 4, 64>}, {pipeline_mode = #tpu.pipeline_mode<synchronous>, transform_indices = @transform_8, window_bounds = array<i64: 2, 4, 64>}, {pipeline_mode = #tpu.pipeline_mode<synchronous>, transform_indices = @transform_9, window_bounds = array<i64: 2, 1, 64>}, {pipeline_mode = #tpu.pipeline_mode<synchronous>, transform_indices = @transform_10, window_bounds = array<i64: 4, 64, 64>}, {pipeline_mode = #tpu.pipeline_mode<synchronous>, transform_indices = @transform_11, window_bounds = array<i64: 4, 1, 64>}, {pipeline_mode = #tpu.pipeline_mode<synchronous>, transform_indices = @transform_12, window_bounds = array<i64: 2, 64, 4>}, {pipeline_mode = #tpu.pipeline_mode<synchronous>, transform_indices = @transform_13, window_bounds = array<i64: 2, 1, 4>}, {pipeline_mode = #tpu.pipeline_mode<synchronous>, transform_indices = @transform_14, window_bounds = array<i64: 2, 64, 4>}, {pipeline_mode = #tpu.pipeline_mode<synchronous>, transform_indices = @transform_15, window_bounds = array<i64: 2, 1, 4>}, {transform_indices = @transform_16, window_bounds = array<i64: 16, 8>}, {transform_indices = @transform_17, window_bounds = array<i64: 16, 1>}]} {
    %c0 = arith.constant 0 : index
    %c0_0 = arith.constant 0 : index
    %0 = vector.load %arg1[%c0, %c0_0] : memref<16x4xf32, #tpu.memory_space<vmem>>, vector<16x4xf32>
    %c0_1 = arith.constant 0 : index
    %c0_2 = arith.constant 0 : index
    %1 = vector.load %arg2[%c0_1, %c0_2] : memref<16x4xf32, #tpu.memory_space<vmem>>, vector<16x4xf32>
    %c0_3 = arith.constant 0 : index
    %c0_4 = arith.constant 0 : index
    %2 = vector.load %arg3[%c0_3, %c0_4] : memref<16x4xbf16, #tpu.memory_space<vmem>>, vector<16x4xbf16>
    %c0_5 = arith.constant 0 : index
    %c0_6 = arith.constant 0 : index
    %3 = vector.load %arg5[%c0_5, %c0_6] : memref<1x4xf32, #tpu.memory_space<vmem>>, vector<1x4xf32>
    %c0_7 = arith.constant 0 : index
    %c0_8 = arith.constant 0 : index
    %4 = vector.load %arg4[%c0_7, %c0_8] : memref<1x4xf32, #tpu.memory_space<vmem>>, vector<1x4xf32>
    %5 = vector.broadcast %4 : vector<1x4xf32> to vector<16x4xf32>
    %6 = arith.addf %0, %5 : vector<16x4xf32>
    %7 = vector.broadcast %3 : vector<1x4xf32> to vector<16x4xf32>
    %8 = arith.mulf %7, %6 : vector<16x4xf32>
    %cst = arith.constant 0.000000e+00 : f32
    %9 = vector.broadcast %cst : f32 to vector<16x4xf32>
    %10 = arith.cmpf oge, %8, %9 : vector<16x4xf32>
    %cst_9 = arith.constant 0.899999976 : f32
    %11 = vector.broadcast %cst_9 : f32 to vector<16x4xf32>
    %12 = arith.mulf %11, %8 : vector<16x4xf32>
    %13 = arith.select %10, %8, %12 : vector<16x4xi1>, vector<16x4xf32>
    %c0_10 = arith.constant 0 : index
    %c0_11 = arith.constant 0 : index
    %14 = vector.load %arg7[%c0_10, %c0_11] : memref<1x4xf32, #tpu.memory_space<vmem>>, vector<1x4xf32>
    %c0_12 = arith.constant 0 : index
    %c0_13 = arith.constant 0 : index
    %15 = vector.load %arg6[%c0_12, %c0_13] : memref<1x4xf32, #tpu.memory_space<vmem>>, vector<1x4xf32>
    %16 = vector.broadcast %15 : vector<1x4xf32> to vector<16x4xf32>
    %17 = arith.addf %1, %16 : vector<16x4xf32>
    %18 = vector.broadcast %14 : vector<1x4xf32> to vector<16x4xf32>
    %19 = arith.mulf %18, %17 : vector<16x4xf32>
    %cst_14 = arith.constant 0.000000e+00 : f32
    %20 = vector.broadcast %cst_14 : f32 to vector<16x4xf32>
    %21 = arith.cmpf oge, %19, %20 : vector<16x4xf32>
    %cst_15 = arith.constant 0.899999976 : f32
    %22 = vector.broadcast %cst_15 : f32 to vector<16x4xf32>
    %23 = arith.mulf %22, %19 : vector<16x4xf32>
    %24 = arith.select %21, %19, %23 : vector<16x4xi1>, vector<16x4xf32>
    %25 = arith.truncf %13 : vector<16x4xf32> to vector<16x4xbf16>
    %c0_16 = arith.constant 0 : index
    %c0_17 = arith.constant 0 : index
    %c0_18 = arith.constant 0 : index
    %26 = vector.load %arg8[%c0_16, %c0_17, %c0_18] : memref<2x4x64xbf16, #tpu.memory_space<vmem>>, vector<1x4x64xbf16>
    %27 = vector.shape_cast %26 : vector<1x4x64xbf16> to vector<4x64xbf16>
    %cst_19 = arith.constant dense<0.000000e+00> : vector<16x64xf32>
    %28 = tpu.matmul %25, %27, %cst_19 {dimension_numbers = #tpu.dot_dimension_numbers<[1], [0], [0], [1], [0, 0, 1, 1], [], []>} : vector<16x4xbf16>, vector<4x64xbf16>, vector<16x64xf32> -> vector<16x64xf32>
    %c0_20 = arith.constant 0 : index
    %c0_21 = arith.constant 0 : index
    %c0_22 = arith.constant 0 : index
    %29 = vector.load %arg9[%c0_20, %c0_21, %c0_22] : memref<2x4x64xbf16, #tpu.memory_space<vmem>>, vector<1x4x64xbf16>
    %30 = vector.shape_cast %29 : vector<1x4x64xbf16> to vector<4x64xbf16>
    %cst_23 = arith.constant dense<0.000000e+00> : vector<16x64xf32>
    %31 = tpu.matmul %2, %30, %cst_23 {dimension_numbers = #tpu.dot_dimension_numbers<[1], [0], [0], [1], [0, 0, 1, 1], [], []>} : vector<16x4xbf16>, vector<4x64xbf16>, vector<16x64xf32> -> vector<16x64xf32>
    %32 = arith.addf %28, %31 : vector<16x64xf32>
    %c0_24 = arith.constant 0 : index
    %c0_25 = arith.constant 0 : index
    %c0_26 = arith.constant 0 : index
    %33 = vector.load %arg10[%c0_24, %c0_25, %c0_26] : memref<2x1x64xf32, #tpu.memory_space<vmem>>, vector<1x1x64xf32>
    %34 = vector.shape_cast %33 : vector<1x1x64xf32> to vector<1x64xf32>
    %35 = vector.broadcast %34 : vector<1x64xf32> to vector<16x64xf32>
    %36 = arith.addf %32, %35 : vector<16x64xf32>
    %cst_27 = arith.constant 0.000000e+00 : f32
    %37 = vector.broadcast %cst_27 : f32 to vector<16x64xf32>
    %38 = arith.cmpf oge, %36, %37 : vector<16x64xf32>
    %cst_28 = arith.constant 0.00999999977 : f32
    %39 = vector.broadcast %cst_28 : f32 to vector<16x64xf32>
    %40 = arith.mulf %39, %36 : vector<16x64xf32>
    %41 = arith.select %38, %36, %40 : vector<16x64xi1>, vector<16x64xf32>
    %42 = arith.truncf %41 : vector<16x64xf32> to vector<16x64xbf16>
    %c0_29 = arith.constant 0 : index
    %c0_30 = arith.constant 0 : index
    %c0_31 = arith.constant 0 : index
    %43 = vector.load %arg11[%c0_29, %c0_30, %c0_31] : memref<4x64x64xbf16, #tpu.memory_space<vmem>>, vector<1x64x64xbf16>
    %44 = vector.shape_cast %43 : vector<1x64x64xbf16> to vector<64x64xbf16>
    %cst_32 = arith.constant dense<0.000000e+00> : vector<16x64xf32>
    %45 = tpu.matmul %42, %44, %cst_32 {dimension_numbers = #tpu.dot_dimension_numbers<[1], [0], [0], [1], [0, 0, 1, 1], [], []>} : vector<16x64xbf16>, vector<64x64xbf16>, vector<16x64xf32> -> vector<16x64xf32>
    %c0_33 = arith.constant 0 : index
    %c0_34 = arith.constant 0 : index
    %c0_35 = arith.constant 0 : index
    %46 = vector.load %arg12[%c0_33, %c0_34, %c0_35] : memref<4x1x64xf32, #tpu.memory_space<vmem>>, vector<1x1x64xf32>
    %47 = vector.shape_cast %46 : vector<1x1x64xf32> to vector<1x64xf32>
    %48 = vector.broadcast %47 : vector<1x64xf32> to vector<16x64xf32>
    %49 = arith.addf %45, %48 : vector<16x64xf32>
    %cst_36 = arith.constant 0.000000e+00 : f32
    %50 = vector.broadcast %cst_36 : f32 to vector<16x64xf32>
    %51 = arith.cmpf oge, %49, %50 : vector<16x64xf32>
    %cst_37 = arith.constant 0.00999999977 : f32
    %52 = vector.broadcast %cst_37 : f32 to vector<16x64xf32>
    %53 = arith.mulf %52, %49 : vector<16x64xf32>
    %54 = arith.select %51, %49, %53 : vector<16x64xi1>, vector<16x64xf32>
    %55 = arith.truncf %54 : vector<16x64xf32> to vector<16x64xbf16>
    %c1 = arith.constant 1 : index
    %c0_38 = arith.constant 0 : index
    %c0_39 = arith.constant 0 : index
    %56 = vector.load %arg11[%c1, %c0_38, %c0_39] : memref<4x64x64xbf16, #tpu.memory_space<vmem>>, vector<1x64x64xbf16>
    %57 = vector.shape_cast %56 : vector<1x64x64xbf16> to vector<64x64xbf16>
    %cst_40 = arith.constant dense<0.000000e+00> : vector<16x64xf32>
    %58 = tpu.matmul %55, %57, %cst_40 {dimension_numbers = #tpu.dot_dimension_numbers<[1], [0], [0], [1], [0, 0, 1, 1], [], []>} : vector<16x64xbf16>, vector<64x64xbf16>, vector<16x64xf32> -> vector<16x64xf32>
    %c1_41 = arith.constant 1 : index
    %c0_42 = arith.constant 0 : index
    %c0_43 = arith.constant 0 : index
    %59 = vector.load %arg12[%c1_41, %c0_42, %c0_43] : memref<4x1x64xf32, #tpu.memory_space<vmem>>, vector<1x1x64xf32>
    %60 = vector.shape_cast %59 : vector<1x1x64xf32> to vector<1x64xf32>
    %61 = vector.broadcast %60 : vector<1x64xf32> to vector<16x64xf32>
    %62 = arith.addf %58, %61 : vector<16x64xf32>
    %cst_44 = arith.constant 0.000000e+00 : f32
    %63 = vector.broadcast %cst_44 : f32 to vector<16x64xf32>
    %64 = arith.cmpf oge, %62, %63 : vector<16x64xf32>
    %cst_45 = arith.constant 0.00999999977 : f32
    %65 = vector.broadcast %cst_45 : f32 to vector<16x64xf32>
    %66 = arith.mulf %65, %62 : vector<16x64xf32>
    %67 = arith.select %64, %62, %66 : vector<16x64xi1>, vector<16x64xf32>
    %68 = arith.truncf %67 : vector<16x64xf32> to vector<16x64xbf16>
    %c0_46 = arith.constant 0 : index
    %c0_47 = arith.constant 0 : index
    %c0_48 = arith.constant 0 : index
    %69 = vector.load %arg13[%c0_46, %c0_47, %c0_48] : memref<2x64x4xbf16, #tpu.memory_space<vmem>>, vector<1x64x4xbf16>
    %70 = vector.shape_cast %69 : vector<1x64x4xbf16> to vector<64x4xbf16>
    %cst_49 = arith.constant dense<0.000000e+00> : vector<16x4xf32>
    %71 = tpu.matmul %68, %70, %cst_49 {dimension_numbers = #tpu.dot_dimension_numbers<[1], [0], [0], [1], [0, 0, 1, 1], [], []>} : vector<16x64xbf16>, vector<64x4xbf16>, vector<16x4xf32> -> vector<16x4xf32>
    %c0_50 = arith.constant 0 : index
    %c0_51 = arith.constant 0 : index
    %c0_52 = arith.constant 0 : index
    %72 = vector.load %arg14[%c0_50, %c0_51, %c0_52] : memref<2x1x4xf32, #tpu.memory_space<vmem>>, vector<1x1x4xf32>
    %73 = vector.shape_cast %72 : vector<1x1x4xf32> to vector<1x4xf32>
    %74 = vector.broadcast %73 : vector<1x4xf32> to vector<16x4xf32>
    %75 = arith.addf %71, %74 : vector<16x4xf32>
    %76 = math.tanh %75 : vector<16x4xf32>
    %c0_53 = arith.constant 0 : index
    %c0_54 = arith.constant 0 : index
    %c0_55 = arith.constant 0 : index
    %77 = vector.load %arg15[%c0_53, %c0_54, %c0_55] : memref<2x64x4xbf16, #tpu.memory_space<vmem>>, vector<1x64x4xbf16>
    %78 = vector.shape_cast %77 : vector<1x64x4xbf16> to vector<64x4xbf16>
    %cst_56 = arith.constant dense<0.000000e+00> : vector<16x4xf32>
    %79 = tpu.matmul %68, %78, %cst_56 {dimension_numbers = #tpu.dot_dimension_numbers<[1], [0], [0], [1], [0, 0, 1, 1], [], []>} : vector<16x64xbf16>, vector<64x4xbf16>, vector<16x4xf32> -> vector<16x4xf32>
    %c0_57 = arith.constant 0 : index
    %c0_58 = arith.constant 0 : index
    %c0_59 = arith.constant 0 : index
    %80 = vector.load %arg16[%c0_57, %c0_58, %c0_59] : memref<2x1x4xf32, #tpu.memory_space<vmem>>, vector<1x1x4xf32>
    %81 = vector.shape_cast %80 : vector<1x1x4xf32> to vector<1x4xf32>
    %82 = vector.broadcast %81 : vector<1x4xf32> to vector<16x4xf32>
    %83 = arith.addf %79, %82 : vector<16x4xf32>
    %84 = math.exp %76 : vector<16x4xf32>
    %85 = arith.mulf %24, %84 : vector<16x4xf32>
    %86 = arith.addf %85, %83 : vector<16x4xf32>
    %87 = arith.truncf %86 : vector<16x4xf32> to vector<16x4xbf16>
    %c1_60 = arith.constant 1 : index
    %c0_61 = arith.constant 0 : index
    %c0_62 = arith.constant 0 : index
    %88 = vector.load %arg8[%c1_60, %c0_61, %c0_62] : memref<2x4x64xbf16, #tpu.memory_space<vmem>>, vector<1x4x64xbf16>
    %89 = vector.shape_cast %88 : vector<1x4x64xbf16> to vector<4x64xbf16>
    %cst_63 = arith.constant dense<0.000000e+00> : vector<16x64xf32>
    %90 = tpu.matmul %87, %89, %cst_63 {dimension_numbers = #tpu.dot_dimension_numbers<[1], [0], [0], [1], [0, 0, 1, 1], [], []>} : vector<16x4xbf16>, vector<4x64xbf16>, vector<16x64xf32> -> vector<16x64xf32>
    %c1_64 = arith.constant 1 : index
    %c0_65 = arith.constant 0 : index
    %c0_66 = arith.constant 0 : index
    %91 = vector.load %arg9[%c1_64, %c0_65, %c0_66] : memref<2x4x64xbf16, #tpu.memory_space<vmem>>, vector<1x4x64xbf16>
    %92 = vector.shape_cast %91 : vector<1x4x64xbf16> to vector<4x64xbf16>
    %cst_67 = arith.constant dense<0.000000e+00> : vector<16x64xf32>
    %93 = tpu.matmul %2, %92, %cst_67 {dimension_numbers = #tpu.dot_dimension_numbers<[1], [0], [0], [1], [0, 0, 1, 1], [], []>} : vector<16x4xbf16>, vector<4x64xbf16>, vector<16x64xf32> -> vector<16x64xf32>
    %94 = arith.addf %90, %93 : vector<16x64xf32>
    %c1_68 = arith.constant 1 : index
    %c0_69 = arith.constant 0 : index
    %c0_70 = arith.constant 0 : index
    %95 = vector.load %arg10[%c1_68, %c0_69, %c0_70] : memref<2x1x64xf32, #tpu.memory_space<vmem>>, vector<1x1x64xf32>
    %96 = vector.shape_cast %95 : vector<1x1x64xf32> to vector<1x64xf32>
    %97 = vector.broadcast %96 : vector<1x64xf32> to vector<16x64xf32>
    %98 = arith.addf %94, %97 : vector<16x64xf32>
    %cst_71 = arith.constant 0.000000e+00 : f32
    %99 = vector.broadcast %cst_71 : f32 to vector<16x64xf32>
    %100 = arith.cmpf oge, %98, %99 : vector<16x64xf32>
    %cst_72 = arith.constant 0.00999999977 : f32
    %101 = vector.broadcast %cst_72 : f32 to vector<16x64xf32>
    %102 = arith.mulf %101, %98 : vector<16x64xf32>
    %103 = arith.select %100, %98, %102 : vector<16x64xi1>, vector<16x64xf32>
    %104 = arith.truncf %103 : vector<16x64xf32> to vector<16x64xbf16>
    %c2 = arith.constant 2 : index
    %c0_73 = arith.constant 0 : index
    %c0_74 = arith.constant 0 : index
    %105 = vector.load %arg11[%c2, %c0_73, %c0_74] : memref<4x64x64xbf16, #tpu.memory_space<vmem>>, vector<1x64x64xbf16>
    %106 = vector.shape_cast %105 : vector<1x64x64xbf16> to vector<64x64xbf16>
    %cst_75 = arith.constant dense<0.000000e+00> : vector<16x64xf32>
    %107 = tpu.matmul %104, %106, %cst_75 {dimension_numbers = #tpu.dot_dimension_numbers<[1], [0], [0], [1], [0, 0, 1, 1], [], []>} : vector<16x64xbf16>, vector<64x64xbf16>, vector<16x64xf32> -> vector<16x64xf32>
    %c2_76 = arith.constant 2 : index
    %c0_77 = arith.constant 0 : index
    %c0_78 = arith.constant 0 : index
    %108 = vector.load %arg12[%c2_76, %c0_77, %c0_78] : memref<4x1x64xf32, #tpu.memory_space<vmem>>, vector<1x1x64xf32>
    %109 = vector.shape_cast %108 : vector<1x1x64xf32> to vector<1x64xf32>
    %110 = vector.broadcast %109 : vector<1x64xf32> to vector<16x64xf32>
    %111 = arith.addf %107, %110 : vector<16x64xf32>
    %cst_79 = arith.constant 0.000000e+00 : f32
    %112 = vector.broadcast %cst_79 : f32 to vector<16x64xf32>
    %113 = arith.cmpf oge, %111, %112 : vector<16x64xf32>
    %cst_80 = arith.constant 0.00999999977 : f32
    %114 = vector.broadcast %cst_80 : f32 to vector<16x64xf32>
    %115 = arith.mulf %114, %111 : vector<16x64xf32>
    %116 = arith.select %113, %111, %115 : vector<16x64xi1>, vector<16x64xf32>
    %117 = arith.truncf %116 : vector<16x64xf32> to vector<16x64xbf16>
    %c3 = arith.constant 3 : index
    %c0_81 = arith.constant 0 : index
    %c0_82 = arith.constant 0 : index
    %118 = vector.load %arg11[%c3, %c0_81, %c0_82] : memref<4x64x64xbf16, #tpu.memory_space<vmem>>, vector<1x64x64xbf16>
    %119 = vector.shape_cast %118 : vector<1x64x64xbf16> to vector<64x64xbf16>
    %cst_83 = arith.constant dense<0.000000e+00> : vector<16x64xf32>
    %120 = tpu.matmul %117, %119, %cst_83 {dimension_numbers = #tpu.dot_dimension_numbers<[1], [0], [0], [1], [0, 0, 1, 1], [], []>} : vector<16x64xbf16>, vector<64x64xbf16>, vector<16x64xf32> -> vector<16x64xf32>
    %c3_84 = arith.constant 3 : index
    %c0_85 = arith.constant 0 : index
    %c0_86 = arith.constant 0 : index
    %121 = vector.load %arg12[%c3_84, %c0_85, %c0_86] : memref<4x1x64xf32, #tpu.memory_space<vmem>>, vector<1x1x64xf32>
    %122 = vector.shape_cast %121 : vector<1x1x64xf32> to vector<1x64xf32>
    %123 = vector.broadcast %122 : vector<1x64xf32> to vector<16x64xf32>
    %124 = arith.addf %120, %123 : vector<16x64xf32>
    %cst_87 = arith.constant 0.000000e+00 : f32
    %125 = vector.broadcast %cst_87 : f32 to vector<16x64xf32>
    %126 = arith.cmpf oge, %124, %125 : vector<16x64xf32>
    %cst_88 = arith.constant 0.00999999977 : f32
    %127 = vector.broadcast %cst_88 : f32 to vector<16x64xf32>
    %128 = arith.mulf %127, %124 : vector<16x64xf32>
    %129 = arith.select %126, %124, %128 : vector<16x64xi1>, vector<16x64xf32>
    %130 = arith.truncf %129 : vector<16x64xf32> to vector<16x64xbf16>
    %c1_89 = arith.constant 1 : index
    %c0_90 = arith.constant 0 : index
    %c0_91 = arith.constant 0 : index
    %131 = vector.load %arg13[%c1_89, %c0_90, %c0_91] : memref<2x64x4xbf16, #tpu.memory_space<vmem>>, vector<1x64x4xbf16>
    %132 = vector.shape_cast %131 : vector<1x64x4xbf16> to vector<64x4xbf16>
    %cst_92 = arith.constant dense<0.000000e+00> : vector<16x4xf32>
    %133 = tpu.matmul %130, %132, %cst_92 {dimension_numbers = #tpu.dot_dimension_numbers<[1], [0], [0], [1], [0, 0, 1, 1], [], []>} : vector<16x64xbf16>, vector<64x4xbf16>, vector<16x4xf32> -> vector<16x4xf32>
    %c1_93 = arith.constant 1 : index
    %c0_94 = arith.constant 0 : index
    %c0_95 = arith.constant 0 : index
    %134 = vector.load %arg14[%c1_93, %c0_94, %c0_95] : memref<2x1x4xf32, #tpu.memory_space<vmem>>, vector<1x1x4xf32>
    %135 = vector.shape_cast %134 : vector<1x1x4xf32> to vector<1x4xf32>
    %136 = vector.broadcast %135 : vector<1x4xf32> to vector<16x4xf32>
    %137 = arith.addf %133, %136 : vector<16x4xf32>
    %138 = math.tanh %137 : vector<16x4xf32>
    %c1_96 = arith.constant 1 : index
    %c0_97 = arith.constant 0 : index
    %c0_98 = arith.constant 0 : index
    %139 = vector.load %arg15[%c1_96, %c0_97, %c0_98] : memref<2x64x4xbf16, #tpu.memory_space<vmem>>, vector<1x64x4xbf16>
    %140 = vector.shape_cast %139 : vector<1x64x4xbf16> to vector<64x4xbf16>
    %cst_99 = arith.constant dense<0.000000e+00> : vector<16x4xf32>
    %141 = tpu.matmul %130, %140, %cst_99 {dimension_numbers = #tpu.dot_dimension_numbers<[1], [0], [0], [1], [0, 0, 1, 1], [], []>} : vector<16x64xbf16>, vector<64x4xbf16>, vector<16x4xf32> -> vector<16x4xf32>
    %c1_100 = arith.constant 1 : index
    %c0_101 = arith.constant 0 : index
    %c0_102 = arith.constant 0 : index
    %142 = vector.load %arg16[%c1_100, %c0_101, %c0_102] : memref<2x1x4xf32, #tpu.memory_space<vmem>>, vector<1x1x4xf32>
    %143 = vector.shape_cast %142 : vector<1x1x4xf32> to vector<1x4xf32>
    %144 = vector.broadcast %143 : vector<1x4xf32> to vector<16x4xf32>
    %145 = arith.addf %141, %144 : vector<16x4xf32>
    %146 = math.exp %138 : vector<16x4xf32>
    %147 = arith.mulf %13, %146 : vector<16x4xf32>
    %148 = arith.addf %147, %145 : vector<16x4xf32>
    %149 = tpu.concatenate %86, %148 in 1 : vector<16x4xf32>, vector<16x4xf32> -> vector<16x8xf32>
    %c0_103 = arith.constant 0 : index
    %c0_104 = arith.constant 0 : index
    %150 = vector.load %arg17[%c0_103, %c0_104] : memref<16x8xf32, #tpu.memory_space<vmem>>, vector<16x8xf32>
    tpu.vector_store %arg17[%c0_103, %c0_104], %149 {strides = array<i32>} : memref<16x8xf32, #tpu.memory_space<vmem>>, vector<16x8xf32>,
    %151 = arith.addf %76, %138 : vector<16x4xf32>
    %cst_105 = arith.constant dense<0.000000e+00> : vector<16xf32>
    %152 = vector.multi_reduction <add>, %151, %cst_105 [1] : vector<16x4xf32> to vector<16xf32>
    %153 = vector.shape_cast %152 : vector<16xf32> to vector<16x1xf32>
    %c0_106 = arith.constant 0 : index
    %c0_107 = arith.constant 0 : index
    %154 = vector.load %arg18[%c0_106, %c0_107] : memref<16x1xf32, #tpu.memory_space<vmem>>, vector<16x1xf32>
    tpu.vector_store %arg18[%c0_106, %c0_107], %153 {strides = array<i32>} : memref<16x1xf32, #tpu.memory_space<vmem>>, vector<16x1xf32>,
    return
  }
  func.func @transform_0(%arg0: i32) -> (i32, i32) {
    %c0_i32 = arith.constant 0 : i32
    %c0_i32_0 = arith.constant 0 : i32
    return %arg0, %c0_i32 : i32, i32
  }
  func.func @transform_1(%arg0: i32) -> (i32, i32) {
    %c0_i32 = arith.constant 0 : i32
    %c0_i32_0 = arith.constant 0 : i32
    return %arg0, %c0_i32 : i32, i32
  }
  func.func @transform_2(%arg0: i32) -> (i32, i32) {
    %c0_i32 = arith.constant 0 : i32
    %c0_i32_0 = arith.constant 0 : i32
    return %arg0, %c0_i32 : i32, i32
  }
  func.func @transform_3(%arg0: i32) -> (i32, i32) {
    %c0_i32 = arith.constant 0 : i32
    %c0_i32_0 = arith.constant 0 : i32
    %c0_i32_1 = arith.constant 0 : i32
    return %c0_i32, %c0_i32_0 : i32, i32
  }
  func.func @transform_4(%arg0: i32) -> (i32, i32) {
    %c0_i32 = arith.constant 0 : i32
    %c0_i32_0 = arith.constant 0 : i32
    %c0_i32_1 = arith.constant 0 : i32
    return %c0_i32, %c0_i32_0 : i32, i32
  }
  func.func @transform_5(%arg0: i32) -> (i32, i32) {
    %c0_i32 = arith.constant 0 : i32
    %c0_i32_0 = arith.constant 0 : i32
    %c0_i32_1 = arith.constant 0 : i32
    return %c0_i32, %c0_i32_0 : i32, i32
  }
  func.func @transform_6(%arg0: i32) -> (i32, i32) {
    %c0_i32 = arith.constant 0 : i32
    %c0_i32_0 = arith.constant 0 : i32
    %c0_i32_1 = arith.constant 0 : i32
    return %c0_i32, %c0_i32_0 : i32, i32
  }
  func.func @transform_7(%arg0: i32) -> (i32, i32, i32) {
    %c0_i32 = arith.constant 0 : i32
    %c0_i32_0 = arith.constant 0 : i32
    %c0_i32_1 = arith.constant 0 : i32
    %c0_i32_2 = arith.constant 0 : i32
    return %c0_i32, %c0_i32_0, %c0_i32_1 : i32, i32, i32
  }
  func.func @transform_8(%arg0: i32) -> (i32, i32, i32) {
    %c0_i32 = arith.constant 0 : i32
    %c0_i32_0 = arith.constant 0 : i32
    %c0_i32_1 = arith.constant 0 : i32
    %c0_i32_2 = arith.constant 0 : i32
    return %c0_i32, %c0_i32_0, %c0_i32_1 : i32, i32, i32
  }
  func.func @transform_9(%arg0: i32) -> (i32, i32, i32) {
    %c0_i32 = arith.constant 0 : i32
    %c0_i32_0 = arith.constant 0 : i32
    %c0_i32_1 = arith.constant 0 : i32
    %c0_i32_2 = arith.constant 0 : i32
    return %c0_i32, %c0_i32_0, %c0_i32_1 : i32, i32, i32
  }
  func.func @transform_10(%arg0: i32) -> (i32, i32, i32) {
    %c0_i32 = arith.constant 0 : i32
    %c0_i32_0 = arith.constant 0 : i32
    %c0_i32_1 = arith.constant 0 : i32
    %c0_i32_2 = arith.constant 0 : i32
    return %c0_i32, %c0_i32_0, %c0_i32_1 : i32, i32, i32
  }
  func.func @transform_11(%arg0: i32) -> (i32, i32, i32) {
    %c0_i32 = arith.constant 0 : i32
    %c0_i32_0 = arith.constant 0 : i32
    %c0_i32_1 = arith.constant 0 : i32
    %c0_i32_2 = arith.constant 0 : i32
    return %c0_i32, %c0_i32_0, %c0_i32_1 : i32, i32, i32
  }
  func.func @transform_12(%arg0: i32) -> (i32, i32, i32) {
    %c0_i32 = arith.constant 0 : i32
    %c0_i32_0 = arith.constant 0 : i32
    %c0_i32_1 = arith.constant 0 : i32
    %c0_i32_2 = arith.constant 0 : i32
    return %c0_i32, %c0_i32_0, %c0_i32_1 : i32, i32, i32
  }
  func.func @transform_13(%arg0: i32) -> (i32, i32, i32) {
    %c0_i32 = arith.constant 0 : i32
    %c0_i32_0 = arith.constant 0 : i32
    %c0_i32_1 = arith.constant 0 : i32
    %c0_i32_2 = arith.constant 0 : i32
    return %c0_i32, %c0_i32_0, %c0_i32_1 : i32, i32, i32
  }
  func.func @transform_14(%arg0: i32) -> (i32, i32, i32) {
    %c0_i32 = arith.constant 0 : i32
    %c0_i32_0 = arith.constant 0 : i32
    %c0_i32_1 = arith.constant 0 : i32
    %c0_i32_2 = arith.constant 0 : i32
    return %c0_i32, %c0_i32_0, %c0_i32_1 : i32, i32, i32
  }
  func.func @transform_15(%arg0: i32) -> (i32, i32, i32) {
    %c0_i32 = arith.constant 0 : i32
    %c0_i32_0 = arith.constant 0 : i32
    %c0_i32_1 = arith.constant 0 : i32
    %c0_i32_2 = arith.constant 0 : i32
    return %c0_i32, %c0_i32_0, %c0_i32_1 : i32, i32, i32
  }
  func.func @transform_16(%arg0: i32) -> (i32, i32) {
    %c0_i32 = arith.constant 0 : i32
    %c0_i32_0 = arith.constant 0 : i32
    return %arg0, %c0_i32 : i32, i32
  }
  func.func @transform_17(%arg0: i32) -> (i32, i32) {
    %c0_i32 = arith.constant 0 : i32
    %c0_i32_0 = arith.constant 0 : i32
    return %arg0, %c0_i32 : i32, i32
  }
}

module attributes {stable_mosaic.version = 11 : i64} {
  func.func @flow_block_kernel(%arg0: i32, %arg1: memref<16x4xf32, #tpu.memory_space<vmem>>, %arg2: memref<16x4xf32, #tpu.memory_space<vmem>>, %arg3: memref<16x4xbf16, #tpu.memory_space<vmem>>, %arg4: memref<1x4xf32, #tpu.memory_space<vmem>>, %arg5: memref<1x4xf32, #tpu.memory_space<vmem>>, %arg6: memref<1x4xf32, #tpu.memory_space<vmem>>, %arg7: memref<1x4xf32, #tpu.memory_space<vmem>>, %arg8: memref<2x4x64xbf16, #tpu.memory_space<vmem>>, %arg9: memref<2x4x64xbf16, #tpu.memory_space<vmem>>, %arg10: memref<2x1x64xf32, #tpu.memory_space<vmem>>, %arg11: memref<4x64x64xbf16, #tpu.memory_space<vmem>>, %arg12: memref<4x1x64xf32, #tpu.memory_space<vmem>>, %arg13: memref<2x64x4xbf16, #tpu.memory_space<vmem>>, %arg14: memref<2x1x4xf32, #tpu.memory_space<vmem>>, %arg15: memref<2x64x4xbf16, #tpu.memory_space<vmem>>, %arg16: memref<2x1x4xf32, #tpu.memory_space<vmem>>, %arg17: memref<16x8xf32, #tpu.memory_space<vmem>>, %arg18: memref<16x1xf32, #tpu.memory_space<vmem>>) attributes {dimension_semantics = [#tpu.dimension_semantics<parallel>], iteration_bounds = array<i64: 2>, scalar_prefetch = 0 : i64, scratch_operands = 0 : i64, tpu.core_type = #tpu.core_type<tc>, window_params = [{transform_indices = @transform_0, window_bounds = array<i64: 16, 4>}, {transform_indices = @transform_1, window_bounds = array<i64: 16, 4>}, {transform_indices = @transform_2, window_bounds = array<i64: 16, 4>}, {pipeline_mode = #tpu.pipeline_mode<synchronous>, transform_indices = @transform_3, window_bounds = array<i64: 1, 4>}, {pipeline_mode = #tpu.pipeline_mode<synchronous>, transform_indices = @transform_4, window_bounds = array<i64: 1, 4>}, {pipeline_mode = #tpu.pipeline_mode<synchronous>, transform_indices = @transform_5, window_bounds = array<i64: 1, 4>}, {pipeline_mode = #tpu.pipeline_mode<synchronous>, transform_indices = @transform_6, window_bounds = array<i64: 1, 4>}, {pipeline_mode = #tpu.pipeline_mode<synchronous>, transform_indices = @transform_7, window_bounds = array<i64: 2, 4, 64>}, {pipeline_mode = #tpu.pipeline_mode<synchronous>, transform_indices = @transform_8, window_bounds = array<i64: 2, 4, 64>}, {pipeline_mode = #tpu.pipeline_mode<synchronous>, transform_indices = @transform_9, window_bounds = array<i64: 2, 1, 64>}, {pipeline_mode = #tpu.pipeline_mode<synchronous>, transform_indices = @transform_10, window_bounds = array<i64: 4, 64, 64>}, {pipeline_mode = #tpu.pipeline_mode<synchronous>, transform_indices = @transform_11, window_bounds = array<i64: 4, 1, 64>}, {pipeline_mode = #tpu.pipeline_mode<synchronous>, transform_indices = @transform_12, window_bounds = array<i64: 2, 64, 4>}, {pipeline_mode = #tpu.pipeline_mode<synchronous>, transform_indices = @transform_13, window_bounds = array<i64: 2, 1, 4>}, {pipeline_mode = #tpu.pipeline_mode<synchronous>, transform_indices = @transform_14, window_bounds = array<i64: 2, 64, 4>}, {pipeline_mode = #tpu.pipeline_mode<synchronous>, transform_indices = @transform_15, window_bounds = array<i64: 2, 1, 4>}, {transform_indices = @transform_16, window_bounds = array<i64: 16, 8>}, {transform_indices = @transform_17, window_bounds = array<i64: 16, 1>}]} {
    %c0 = arith.constant 0 : index
    %c0_0 = arith.constant 0 : index
    %0 = vector.load %arg1[%c0, %c0_0] : memref<16x4xf32, #tpu.memory_space<vmem>>, vector<16x4xf32>
    %c0_1 = arith.constant 0 : index
    %c0_2 = arith.constant 0 : index
    %1 = vector.load %arg2[%c0_1, %c0_2] : memref<16x4xf32, #tpu.memory_space<vmem>>, vector<16x4xf32>
    %c0_3 = arith.constant 0 : index
    %c0_4 = arith.constant 0 : index
    %2 = vector.load %arg3[%c0_3, %c0_4] : memref<16x4xbf16, #tpu.memory_space<vmem>>, vector<16x4xbf16>
    %c0_5 = arith.constant 0 : index
    %c0_6 = arith.constant 0 : index
    %3 = vector.load %arg5[%c0_5, %c0_6] : memref<1x4xf32, #tpu.memory_space<vmem>>, vector<1x4xf32>
    %c0_7 = arith.constant 0 : index
    %c0_8 = arith.constant 0 : index
    %4 = vector.load %arg4[%c0_7, %c0_8] : memref<1x4xf32, #tpu.memory_space<vmem>>, vector<1x4xf32>
    %5 = vector.broadcast %4 : vector<1x4xf32> to vector<16x4xf32>
    %6 = arith.addf %0, %5 : vector<16x4xf32>
    %7 = vector.broadcast %3 : vector<1x4xf32> to vector<16x4xf32>
    %8 = arith.mulf %7, %6 : vector<16x4xf32>
    %cst = arith.constant 0.000000e+00 : f32
    %9 = vector.broadcast %cst : f32 to vector<16x4xf32>
    %10 = arith.cmpf oge, %8, %9 : vector<16x4xf32>
    %cst_9 = arith.constant 0.899999976 : f32
    %11 = vector.broadcast %cst_9 : f32 to vector<16x4xf32>
    %12 = arith.mulf %11, %8 : vector<16x4xf32>
    %13 = arith.select %10, %8, %12 : vector<16x4xi1>, vector<16x4xf32>
    %c0_10 = arith.constant 0 : index
    %c0_11 = arith.constant 0 : index
    %14 = vector.load %arg7[%c0_10, %c0_11] : memref<1x4xf32, #tpu.memory_space<vmem>>, vector<1x4xf32>
    %c0_12 = arith.constant 0 : index
    %c0_13 = arith.constant 0 : index
    %15 = vector.load %arg6[%c0_12, %c0_13] : memref<1x4xf32, #tpu.memory_space<vmem>>, vector<1x4xf32>
    %16 = vector.broadcast %15 : vector<1x4xf32> to vector<16x4xf32>
    %17 = arith.addf %1, %16 : vector<16x4xf32>
    %18 = vector.broadcast %14 : vector<1x4xf32> to vector<16x4xf32>
    %19 = arith.mulf %18, %17 : vector<16x4xf32>
    %cst_14 = arith.constant 0.000000e+00 : f32
    %20 = vector.broadcast %cst_14 : f32 to vector<16x4xf32>
    %21 = arith.cmpf oge, %19, %20 : vector<16x4xf32>
    %cst_15 = arith.constant 0.899999976 : f32
    %22 = vector.broadcast %cst_15 : f32 to vector<16x4xf32>
    %23 = arith.mulf %22, %19 : vector<16x4xf32>
    %24 = arith.select %21, %19, %23 : vector<16x4xi1>, vector<16x4xf32>
    %25 = arith.truncf %13 : vector<16x4xf32> to vector<16x4xbf16>
    %c0_16 = arith.constant 0 : index
    %c0_17 = arith.constant 0 : index
    %c0_18 = arith.constant 0 : index
    %26 = vector.load %arg8[%c0_16, %c0_17, %c0_18] : memref<2x4x64xbf16, #tpu.memory_space<vmem>>, vector<1x4x64xbf16>
    %27 = vector.shape_cast %26 : vector<1x4x64xbf16> to vector<4x64xbf16>
    %cst_19 = arith.constant dense<0.000000e+00> : vector<16x64xf32>
    %28 = tpu.matmul %25, %27, %cst_19 {dimension_numbers = #tpu.dot_dimension_numbers<[1], [0], [0], [1], [0, 0, 1, 1], [], []>} : vector<16x4xbf16>, vector<4x64xbf16>, vector<16x64xf32> -> vector<16x64xf32>
    %c0_20 = arith.constant 0 : index
    %c0_21 = arith.constant 0 : index
    %c0_22 = arith.constant 0 : index
    %29 = vector.load %arg9[%c0_20, %c0_21, %c0_22] : memref<2x4x64xbf16, #tpu.memory_space<vmem>>, vector<1x4x64xbf16>
    %30 = vector.shape_cast %29 : vector<1x4x64xbf16> to vector<4x64xbf16>
    %cst_23 = arith.constant dense<0.000000e+00> : vector<16x64xf32>
    %31 = tpu.matmul %2, %30, %cst_23 {dimension_numbers = #tpu.dot_dimension_numbers<[1], [0], [0], [1], [0, 0, 1, 1], [], []>} : vector<16x4xbf16>, vector<4x64xbf16>, vector<16x64xf32> -> vector<16x64xf32>
    %32 = arith.addf %28, %31 : vector<16x64xf32>
    %c0_24 = arith.constant 0 : index
    %c0_25 = arith.constant 0 : index
    %c0_26 = arith.constant 0 : index
    %33 = vector.load %arg10[%c0_24, %c0_25, %c0_26] : memref<2x1x64xf32, #tpu.memory_space<vmem>>, vector<1x1x64xf32>
    %34 = vector.shape_cast %33 : vector<1x1x64xf32> to vector<1x64xf32>
    %35 = vector.broadcast %34 : vector<1x64xf32> to vector<16x64xf32>
    %36 = arith.addf %32, %35 : vector<16x64xf32>
    %cst_27 = arith.constant 0.000000e+00 : f32
    %37 = vector.broadcast %cst_27 : f32 to vector<16x64xf32>
    %38 = arith.cmpf oge, %36, %37 : vector<16x64xf32>
    %cst_28 = arith.constant 0.00999999977 : f32
    %39 = vector.broadcast %cst_28 : f32 to vector<16x64xf32>
    %40 = arith.mulf %39, %36 : vector<16x64xf32>
    %41 = arith.select %38, %36, %40 : vector<16x64xi1>, vector<16x64xf32>
    %42 = arith.truncf %41 : vector<16x64xf32> to vector<16x64xbf16>
    %c0_29 = arith.constant 0 : index
    %c0_30 = arith.constant 0 : index
    %c0_31 = arith.constant 0 : index
    %43 = vector.load %arg11[%c0_29, %c0_30, %c0_31] : memref<4x64x64xbf16, #tpu.memory_space<vmem>>, vector<1x64x64xbf16>
    %44 = vector.shape_cast %43 : vector<1x64x64xbf16> to vector<64x64xbf16>
    %cst_32 = arith.constant dense<0.000000e+00> : vector<16x64xf32>
    %45 = tpu.matmul %42, %44, %cst_32 {dimension_numbers = #tpu.dot_dimension_numbers<[1], [0], [0], [1], [0, 0, 1, 1], [], []>} : vector<16x64xbf16>, vector<64x64xbf16>, vector<16x64xf32> -> vector<16x64xf32>
    %c0_33 = arith.constant 0 : index
    %c0_34 = arith.constant 0 : index
    %c0_35 = arith.constant 0 : index
    %46 = vector.load %arg12[%c0_33, %c0_34, %c0_35] : memref<4x1x64xf32, #tpu.memory_space<vmem>>, vector<1x1x64xf32>
    %47 = vector.shape_cast %46 : vector<1x1x64xf32> to vector<1x64xf32>
    %48 = vector.broadcast %47 : vector<1x64xf32> to vector<16x64xf32>
    %49 = arith.addf %45, %48 : vector<16x64xf32>
    %cst_36 = arith.constant 0.000000e+00 : f32
    %50 = vector.broadcast %cst_36 : f32 to vector<16x64xf32>
    %51 = arith.cmpf oge, %49, %50 : vector<16x64xf32>
    %cst_37 = arith.constant 0.00999999977 : f32
    %52 = vector.broadcast %cst_37 : f32 to vector<16x64xf32>
    %53 = arith.mulf %52, %49 : vector<16x64xf32>
    %54 = arith.select %51, %49, %53 : vector<16x64xi1>, vector<16x64xf32>
    %55 = arith.truncf %54 : vector<16x64xf32> to vector<16x64xbf16>
    %c1 = arith.constant 1 : index
    %c0_38 = arith.constant 0 : index
    %c0_39 = arith.constant 0 : index
    %56 = vector.load %arg11[%c1, %c0_38, %c0_39] : memref<4x64x64xbf16, #tpu.memory_space<vmem>>, vector<1x64x64xbf16>
    %57 = vector.shape_cast %56 : vector<1x64x64xbf16> to vector<64x64xbf16>
    %cst_40 = arith.constant dense<0.000000e+00> : vector<16x64xf32>
    %58 = tpu.matmul %55, %57, %cst_40 {dimension_numbers = #tpu.dot_dimension_numbers<[1], [0], [0], [1], [0, 0, 1, 1], [], []>} : vector<16x64xbf16>, vector<64x64xbf16>, vector<16x64xf32> -> vector<16x64xf32>
    %c1_41 = arith.constant 1 : index
    %c0_42 = arith.constant 0 : index
    %c0_43 = arith.constant 0 : index
    %59 = vector.load %arg12[%c1_41, %c0_42, %c0_43] : memref<4x1x64xf32, #tpu.memory_space<vmem>>, vector<1x1x64xf32>
    %60 = vector.shape_cast %59 : vector<1x1x64xf32> to vector<1x64xf32>
    %61 = vector.broadcast %60 : vector<1x64xf32> to vector<16x64xf32>
    %62 = arith.addf %58, %61 : vector<16x64xf32>
    %cst_44 = arith.constant 0.000000e+00 : f32
    %63 = vector.broadcast %cst_44 : f32 to vector<16x64xf32>
    %64 = arith.cmpf oge, %62, %63 : vector<16x64xf32>
    %cst_45 = arith.constant 0.00999999977 : f32
    %65 = vector.broadcast %cst_45 : f32 to vector<16x64xf32>
    %66 = arith.mulf %65, %62 : vector<16x64xf32>
    %67 = arith.select %64, %62, %66 : vector<16x64xi1>, vector<16x64xf32>
    %68 = arith.truncf %67 : vector<16x64xf32> to vector<16x64xbf16>
    %c0_46 = arith.constant 0 : index
    %c0_47 = arith.constant 0 : index
    %c0_48 = arith.constant 0 : index
    %69 = vector.load %arg13[%c0_46, %c0_47, %c0_48] : memref<2x64x4xbf16, #tpu.memory_space<vmem>>, vector<1x64x4xbf16>
    %70 = vector.shape_cast %69 : vector<1x64x4xbf16> to vector<64x4xbf16>
    %cst_49 = arith.constant dense<0.000000e+00> : vector<16x4xf32>
    %71 = tpu.matmul %68, %70, %cst_49 {dimension_numbers = #tpu.dot_dimension_numbers<[1], [0], [0], [1], [0, 0, 1, 1], [], []>} : vector<16x64xbf16>, vector<64x4xbf16>, vector<16x4xf32> -> vector<16x4xf32>
    %c0_50 = arith.constant 0 : index
    %c0_51 = arith.constant 0 : index
    %c0_52 = arith.constant 0 : index
    %72 = vector.load %arg14[%c0_50, %c0_51, %c0_52] : memref<2x1x4xf32, #tpu.memory_space<vmem>>, vector<1x1x4xf32>
    %73 = vector.shape_cast %72 : vector<1x1x4xf32> to vector<1x4xf32>
    %74 = vector.broadcast %73 : vector<1x4xf32> to vector<16x4xf32>
    %75 = arith.addf %71, %74 : vector<16x4xf32>
    %76 = math.tanh %75 : vector<16x4xf32>
    %c0_53 = arith.constant 0 : index
    %c0_54 = arith.constant 0 : index
    %c0_55 = arith.constant 0 : index
    %77 = vector.load %arg15[%c0_53, %c0_54, %c0_55] : memref<2x64x4xbf16, #tpu.memory_space<vmem>>, vector<1x64x4xbf16>
    %78 = vector.shape_cast %77 : vector<1x64x4xbf16> to vector<64x4xbf16>
    %cst_56 = arith.constant dense<0.000000e+00> : vector<16x4xf32>
    %79 = tpu.matmul %68, %78, %cst_56 {dimension_numbers = #tpu.dot_dimension_numbers<[1], [0], [0], [1], [0, 0, 1, 1], [], []>} : vector<16x64xbf16>, vector<64x4xbf16>, vector<16x4xf32> -> vector<16x4xf32>
    %c0_57 = arith.constant 0 : index
    %c0_58 = arith.constant 0 : index
    %c0_59 = arith.constant 0 : index
    %80 = vector.load %arg16[%c0_57, %c0_58, %c0_59] : memref<2x1x4xf32, #tpu.memory_space<vmem>>, vector<1x1x4xf32>
    %81 = vector.shape_cast %80 : vector<1x1x4xf32> to vector<1x4xf32>
    %82 = vector.broadcast %81 : vector<1x4xf32> to vector<16x4xf32>
    %83 = arith.addf %79, %82 : vector<16x4xf32>
    %84 = math.exp %76 : vector<16x4xf32>
    %85 = arith.mulf %24, %84 : vector<16x4xf32>
    %86 = arith.addf %85, %83 : vector<16x4xf32>
    %87 = arith.truncf %86 : vector<16x4xf32> to vector<16x4xbf16>
    %c1_60 = arith.constant 1 : index
    %c0_61 = arith.constant 0 : index
    %c0_62 = arith.constant 0 : index
    %88 = vector.load %arg8[%c1_60, %c0_61, %c0_62] : memref<2x4x64xbf16, #tpu.memory_space<vmem>>, vector<1x4x64xbf16>
    %89 = vector.shape_cast %88 : vector<1x4x64xbf16> to vector<4x64xbf16>
    %cst_63 = arith.constant dense<0.000000e+00> : vector<16x64xf32>
    %90 = tpu.matmul %87, %89, %cst_63 {dimension_numbers = #tpu.dot_dimension_numbers<[1], [0], [0], [1], [0, 0, 1, 1], [], []>} : vector<16x4xbf16>, vector<4x64xbf16>, vector<16x64xf32> -> vector<16x64xf32>
    %c1_64 = arith.constant 1 : index
    %c0_65 = arith.constant 0 : index
    %c0_66 = arith.constant 0 : index
    %91 = vector.load %arg9[%c1_64, %c0_65, %c0_66] : memref<2x4x64xbf16, #tpu.memory_space<vmem>>, vector<1x4x64xbf16>
    %92 = vector.shape_cast %91 : vector<1x4x64xbf16> to vector<4x64xbf16>
    %cst_67 = arith.constant dense<0.000000e+00> : vector<16x64xf32>
    %93 = tpu.matmul %2, %92, %cst_67 {dimension_numbers = #tpu.dot_dimension_numbers<[1], [0], [0], [1], [0, 0, 1, 1], [], []>} : vector<16x4xbf16>, vector<4x64xbf16>, vector<16x64xf32> -> vector<16x64xf32>
    %94 = arith.addf %90, %93 : vector<16x64xf32>
    %c1_68 = arith.constant 1 : index
    %c0_69 = arith.constant 0 : index
    %c0_70 = arith.constant 0 : index
    %95 = vector.load %arg10[%c1_68, %c0_69, %c0_70] : memref<2x1x64xf32, #tpu.memory_space<vmem>>, vector<1x1x64xf32>
    %96 = vector.shape_cast %95 : vector<1x1x64xf32> to vector<1x64xf32>
    %97 = vector.broadcast %96 : vector<1x64xf32> to vector<16x64xf32>
    %98 = arith.addf %94, %97 : vector<16x64xf32>
    %cst_71 = arith.constant 0.000000e+00 : f32
    %99 = vector.broadcast %cst_71 : f32 to vector<16x64xf32>
    %100 = arith.cmpf oge, %98, %99 : vector<16x64xf32>
    %cst_72 = arith.constant 0.00999999977 : f32
    %101 = vector.broadcast %cst_72 : f32 to vector<16x64xf32>
    %102 = arith.mulf %101, %98 : vector<16x64xf32>
    %103 = arith.select %100, %98, %102 : vector<16x64xi1>, vector<16x64xf32>
    %104 = arith.truncf %103 : vector<16x64xf32> to vector<16x64xbf16>
    %c2 = arith.constant 2 : index
    %c0_73 = arith.constant 0 : index
    %c0_74 = arith.constant 0 : index
    %105 = vector.load %arg11[%c2, %c0_73, %c0_74] : memref<4x64x64xbf16, #tpu.memory_space<vmem>>, vector<1x64x64xbf16>
    %106 = vector.shape_cast %105 : vector<1x64x64xbf16> to vector<64x64xbf16>
    %cst_75 = arith.constant dense<0.000000e+00> : vector<16x64xf32>
    %107 = tpu.matmul %104, %106, %cst_75 {dimension_numbers = #tpu.dot_dimension_numbers<[1], [0], [0], [1], [0, 0, 1, 1], [], []>} : vector<16x64xbf16>, vector<64x64xbf16>, vector<16x64xf32> -> vector<16x64xf32>
    %c2_76 = arith.constant 2 : index
    %c0_77 = arith.constant 0 : index
    %c0_78 = arith.constant 0 : index
    %108 = vector.load %arg12[%c2_76, %c0_77, %c0_78] : memref<4x1x64xf32, #tpu.memory_space<vmem>>, vector<1x1x64xf32>
    %109 = vector.shape_cast %108 : vector<1x1x64xf32> to vector<1x64xf32>
    %110 = vector.broadcast %109 : vector<1x64xf32> to vector<16x64xf32>
    %111 = arith.addf %107, %110 : vector<16x64xf32>
    %cst_79 = arith.constant 0.000000e+00 : f32
    %112 = vector.broadcast %cst_79 : f32 to vector<16x64xf32>
    %113 = arith.cmpf oge, %111, %112 : vector<16x64xf32>
    %cst_80 = arith.constant 0.00999999977 : f32
    %114 = vector.broadcast %cst_80 : f32 to vector<16x64xf32>
    %115 = arith.mulf %114, %111 : vector<16x64xf32>
    %116 = arith.select %113, %111, %115 : vector<16x64xi1>, vector<16x64xf32>
    %117 = arith.truncf %116 : vector<16x64xf32> to vector<16x64xbf16>
    %c3 = arith.constant 3 : index
    %c0_81 = arith.constant 0 : index
    %c0_82 = arith.constant 0 : index
    %118 = vector.load %arg11[%c3, %c0_81, %c0_82] : memref<4x64x64xbf16, #tpu.memory_space<vmem>>, vector<1x64x64xbf16>
    %119 = vector.shape_cast %118 : vector<1x64x64xbf16> to vector<64x64xbf16>
    %cst_83 = arith.constant dense<0.000000e+00> : vector<16x64xf32>
    %120 = tpu.matmul %117, %119, %cst_83 {dimension_numbers = #tpu.dot_dimension_numbers<[1], [0], [0], [1], [0, 0, 1, 1], [], []>} : vector<16x64xbf16>, vector<64x64xbf16>, vector<16x64xf32> -> vector<16x64xf32>
    %c3_84 = arith.constant 3 : index
    %c0_85 = arith.constant 0 : index
    %c0_86 = arith.constant 0 : index
    %121 = vector.load %arg12[%c3_84, %c0_85, %c0_86] : memref<4x1x64xf32, #tpu.memory_space<vmem>>, vector<1x1x64xf32>
    %122 = vector.shape_cast %121 : vector<1x1x64xf32> to vector<1x64xf32>
    %123 = vector.broadcast %122 : vector<1x64xf32> to vector<16x64xf32>
    %124 = arith.addf %120, %123 : vector<16x64xf32>
    %cst_87 = arith.constant 0.000000e+00 : f32
    %125 = vector.broadcast %cst_87 : f32 to vector<16x64xf32>
    %126 = arith.cmpf oge, %124, %125 : vector<16x64xf32>
    %cst_88 = arith.constant 0.00999999977 : f32
    %127 = vector.broadcast %cst_88 : f32 to vector<16x64xf32>
    %128 = arith.mulf %127, %124 : vector<16x64xf32>
    %129 = arith.select %126, %124, %128 : vector<16x64xi1>, vector<16x64xf32>
    %130 = arith.truncf %129 : vector<16x64xf32> to vector<16x64xbf16>
    %c1_89 = arith.constant 1 : index
    %c0_90 = arith.constant 0 : index
    %c0_91 = arith.constant 0 : index
    %131 = vector.load %arg13[%c1_89, %c0_90, %c0_91] : memref<2x64x4xbf16, #tpu.memory_space<vmem>>, vector<1x64x4xbf16>
    %132 = vector.shape_cast %131 : vector<1x64x4xbf16> to vector<64x4xbf16>
    %cst_92 = arith.constant dense<0.000000e+00> : vector<16x4xf32>
    %133 = tpu.matmul %130, %132, %cst_92 {dimension_numbers = #tpu.dot_dimension_numbers<[1], [0], [0], [1], [0, 0, 1, 1], [], []>} : vector<16x64xbf16>, vector<64x4xbf16>, vector<16x4xf32> -> vector<16x4xf32>
    %c1_93 = arith.constant 1 : index
    %c0_94 = arith.constant 0 : index
    %c0_95 = arith.constant 0 : index
    %134 = vector.load %arg14[%c1_93, %c0_94, %c0_95] : memref<2x1x4xf32, #tpu.memory_space<vmem>>, vector<1x1x4xf32>
    %135 = vector.shape_cast %134 : vector<1x1x4xf32> to vector<1x4xf32>
    %136 = vector.broadcast %135 : vector<1x4xf32> to vector<16x4xf32>
    %137 = arith.addf %133, %136 : vector<16x4xf32>
    %138 = math.tanh %137 : vector<16x4xf32>
    %c1_96 = arith.constant 1 : index
    %c0_97 = arith.constant 0 : index
    %c0_98 = arith.constant 0 : index
    %139 = vector.load %arg15[%c1_96, %c0_97, %c0_98] : memref<2x64x4xbf16, #tpu.memory_space<vmem>>, vector<1x64x4xbf16>
    %140 = vector.shape_cast %139 : vector<1x64x4xbf16> to vector<64x4xbf16>
    %cst_99 = arith.constant dense<0.000000e+00> : vector<16x4xf32>
    %141 = tpu.matmul %130, %140, %cst_99 {dimension_numbers = #tpu.dot_dimension_numbers<[1], [0], [0], [1], [0, 0, 1, 1], [], []>} : vector<16x64xbf16>, vector<64x4xbf16>, vector<16x4xf32> -> vector<16x4xf32>
    %c1_100 = arith.constant 1 : index
    %c0_101 = arith.constant 0 : index
    %c0_102 = arith.constant 0 : index
    %142 = vector.load %arg16[%c1_100, %c0_101, %c0_102] : memref<2x1x4xf32, #tpu.memory_space<vmem>>, vector<1x1x4xf32>
    %143 = vector.shape_cast %142 : vector<1x1x4xf32> to vector<1x4xf32>
    %144 = vector.broadcast %143 : vector<1x4xf32> to vector<16x4xf32>
    %145 = arith.addf %141, %144 : vector<16x4xf32>
    %146 = math.exp %138 : vector<16x4xf32>
    %147 = arith.mulf %13, %146 : vector<16x4xf32>
    %148 = arith.addf %147, %145 : vector<16x4xf32>
    %149 = tpu.concatenate %86, %148 in 1 : vector<16x4xf32>, vector<16x4xf32> -> vector<16x8xf32>
    %c0_103 = arith.constant 0 : index
    %c0_104 = arith.constant 0 : index
    %150 = vector.load %arg17[%c0_103, %c0_104] : memref<16x8xf32, #tpu.memory_space<vmem>>, vector<16x8xf32>
    tpu.vector_store %arg17[%c0_103, %c0_104], %149 {strides = array<i32>} : memref<16x8xf32, #tpu.memory_space<vmem>>, vector<16x8xf32>,
    %151 = arith.addf %76, %138 : vector<16x4xf32>
    %cst_105 = arith.constant dense<0.000000e+00> : vector<16xf32>
    %152 = vector.multi_reduction <add>, %151, %cst_105 [1] : vector<16x4xf32> to vector<16xf32>
    %153 = vector.shape_cast %152 : vector<16xf32> to vector<16x1xf32>
    %c0_106 = arith.constant 0 : index
    %c0_107 = arith.constant 0 : index
    %154 = vector.load %arg18[%c0_106, %c0_107] : memref<16x1xf32, #tpu.memory_space<vmem>>, vector<16x1xf32>
    tpu.vector_store %arg18[%c0_106, %c0_107], %153 {strides = array<i32>} : memref<16x1xf32, #tpu.memory_space<vmem>>, vector<16x1xf32>,
    return
  }
  func.func @transform_0(%arg0: i32) -> (i32, i32) {
    %c0_i32 = arith.constant 0 : i32
    %c0_i32_0 = arith.constant 0 : i32
    return %arg0, %c0_i32 : i32, i32
  }
  func.func @transform_1(%arg0: i32) -> (i32, i32) {
    %c0_i32 = arith.constant 0 : i32
    %c0_i32_0 = arith.constant 0 : i32
    return %arg0, %c0_i32 : i32, i32
  }
  func.func @transform_2(%arg0: i32) -> (i32, i32) {
    %c0_i32 = arith.constant 0 : i32
    %c0_i32_0 = arith.constant 0 : i32
    return %arg0, %c0_i32 : i32, i32
  }
  func.func @transform_3(%arg0: i32) -> (i32, i32) {
    %c0_i32 = arith.constant 0 : i32
    %c0_i32_0 = arith.constant 0 : i32
    %c0_i32_1 = arith.constant 0 : i32
    return %c0_i32, %c0_i32_0 : i32, i32
  }
  func.func @transform_4(%arg0: i32) -> (i32, i32) {
    %c0_i32 = arith.constant 0 : i32
    %c0_i32_0 = arith.constant 0 : i32
    %c0_i32_1 = arith.constant 0 : i32
    return %c0_i32, %c0_i32_0 : i32, i32
  }
  func.func @transform_5(%arg0: i32) -> (i32, i32) {
    %c0_i32 = arith.constant 0 : i32
    %c0_i32_0 = arith.constant 0 : i32
    %c0_i32_1 = arith.constant 0 : i32
    return %c0_i32, %c0_i32_0 : i32, i32
  }
  func.func @transform_6(%arg0: i32) -> (i32, i32) {
    %c0_i32 = arith.constant 0 : i32
    %c0_i32_0 = arith.constant 0 : i32
    %c0_i32_1 = arith.constant 0 : i32
    return %c0_i32, %c0_i32_0 : i32, i32
  }
  func.func @transform_7(%arg0: i32) -> (i32, i32, i32) {
    %c0_i32 = arith.constant 0 : i32
    %c0_i32_0 = arith.constant 0 : i32
    %c0_i32_1 = arith.constant 0 : i32
    %c0_i32_2 = arith.constant 0 : i32
    return %c0_i32, %c0_i32_0, %c0_i32_1 : i32, i32, i32
  }
  func.func @transform_8(%arg0: i32) -> (i32, i32, i32) {
    %c0_i32 = arith.constant 0 : i32
    %c0_i32_0 = arith.constant 0 : i32
    %c0_i32_1 = arith.constant 0 : i32
    %c0_i32_2 = arith.constant 0 : i32
    return %c0_i32, %c0_i32_0, %c0_i32_1 : i32, i32, i32
  }
  func.func @transform_9(%arg0: i32) -> (i32, i32, i32) {
    %c0_i32 = arith.constant 0 : i32
    %c0_i32_0 = arith.constant 0 : i32
    %c0_i32_1 = arith.constant 0 : i32
    %c0_i32_2 = arith.constant 0 : i32
    return %c0_i32, %c0_i32_0, %c0_i32_1 : i32, i32, i32
  }
  func.func @transform_10(%arg0: i32) -> (i32, i32, i32) {
    %c0_i32 = arith.constant 0 : i32
    %c0_i32_0 = arith.constant 0 : i32
    %c0_i32_1 = arith.constant 0 : i32
    %c0_i32_2 = arith.constant 0 : i32
    return %c0_i32, %c0_i32_0, %c0_i32_1 : i32, i32, i32
  }
  func.func @transform_11(%arg0: i32) -> (i32, i32, i32) {
    %c0_i32 = arith.constant 0 : i32
    %c0_i32_0 = arith.constant 0 : i32
    %c0_i32_1 = arith.constant 0 : i32
    %c0_i32_2 = arith.constant 0 : i32
    return %c0_i32, %c0_i32_0, %c0_i32_1 : i32, i32, i32
  }
  func.func @transform_12(%arg0: i32) -> (i32, i32, i32) {
    %c0_i32 = arith.constant 0 : i32
    %c0_i32_0 = arith.constant 0 : i32
    %c0_i32_1 = arith.constant 0 : i32
    %c0_i32_2 = arith.constant 0 : i32
    return %c0_i32, %c0_i32_0, %c0_i32_1 : i32, i32, i32
  }
  func.func @transform_13(%arg0: i32) -> (i32, i32, i32) {
    %c0_i32 = arith.constant 0 : i32
    %c0_i32_0 = arith.constant 0 : i32
    %c0_i32_1 = arith.constant 0 : i32
    %c0_i32_2 = arith.constant 0 : i32
    return %c0_i32, %c0_i32_0, %c0_i32_1 : i32, i32, i32
  }
  func.func @transform_14(%arg0: i32) -> (i32, i32, i32) {
    %c0_i32 = arith.constant 0 : i32
    %c0_i32_0 = arith.constant 0 : i32
    %c0_i32_1 = arith.constant 0 : i32
    %c0_i32_2 = arith.constant 0 : i32
    return %c0_i32, %c0_i32_0, %c0_i32_1 : i32, i32, i32
  }
  func.func @transform_15(%arg0: i32) -> (i32, i32, i32) {
    %c0_i32 = arith.constant 0 : i32
    %c0_i32_0 = arith.constant 0 : i32
    %c0_i32_1 = arith.constant 0 : i32
    %c0_i32_2 = arith.constant 0 : i32
    return %c0_i32, %c0_i32_0, %c0_i32_1 : i32, i32, i32
  }
  func.func @transform_16(%arg0: i32) -> (i32, i32) {
    %c0_i32 = arith.constant 0 : i32
    %c0_i32_0 = arith.constant 0 : i32
    return %arg0, %c0_i32 : i32, i32
  }
  func.func @transform_17(%arg0: i32) -> (i32, i32) {
    %c0_i32 = arith.constant 0 : i32
    %c0_i32_0 = arith.constant 0 : i32
    return %arg0, %c0_i32 : i32, i32
  }
}

</mosaic_0001>

<bundles_post_ra>
// kernel: tpu_custom_call.1
= control target key start
LH: loop header
LB: loop body
LE: loop exit
PB: predicated region body
PF: predicated region fallthrough
CT: control target
= control target key end

     0   :  { %s2206_s24 = smov 0   ;;  %s2496_s0 = inlined_call_operand.vmem [shape: f32[32,4], index: 0, kind: input, shape index: {}]   ;;  %s2497_s1 = inlined_call_operand.vmem [shape: f32[32,4], index: 1, kind: input, shape index: {}]   ;;  %s2498_s2 = inlined_call_operand.vmem [shape: bf16[32,4], index: 2, kind: input, shape index: {}]   ;;  %s2499_s3 = inlined_call_operand.vmem [shape: f32[1,4], index: 3, kind: input, shape index: {}]   ;;  %s2500_s4 = inlined_call_operand.vmem [shape: f32[1,4], index: 4, kind: input, shape index: {}]   ;;  %s2501_s5 = inlined_call_operand.vmem [shape: f32[1,4], index: 5, kind: input, shape index: {}]   ;;  %s2502_s6 = inlined_call_operand.vmem [shape: f32[1,4], index: 6, kind: input, shape index: {}]   ;;  %s2503_s7 = inlined_call_operand.vmem [shape: bf16[2,4,64], index: 7, kind: input, shape index: {}]   ;;  %s2504_s8 = inlined_call_operand.vmem [shape: bf16[2,4,64], index: 8, kind: input, shape index: {}]   ;;  %s2505_s9 = inlined_call_operand.vmem [shape: f32[2,1,64], index: 9, kind: input, shape index: {}]   ;;  %s2506_s10 = inlined_call_operand.vmem [shape: bf16[4,64,64], index: 10, kind: input, shape index: {}]   ;;  %s2507_s11 = inlined_call_operand.vmem [shape: f32[4,1,64], index: 11, kind: input, shape index: {}]   ;;  %s2508_s12 = inlined_call_operand.vmem [shape: bf16[2,64,4], index: 12, kind: input, shape index: {}]   ;;  %s2509_s13 = inlined_call_operand.vmem [shape: f32[2,1,4], index: 13, kind: input, shape index: {}]   ;;  %s2510_s14 = inlined_call_operand.vmem [shape: bf16[2,64,4], index: 14, kind: input, shape index: {}]   ;;  %s2511_s15 = inlined_call_operand.vmem [shape: f32[2,1,4], index: 15, kind: input, shape index: {}]   ;;  %s2512_s16 = inlined_call_operand.vmem [shape: f32[32,8], index: 16, kind: output, shape index: {0}]   ;;  %s2513_s17 = inlined_call_operand.vmem [shape: f32[32,1], index: 17, kind: output, shape index: {1}]  }
   0x1   :  { %2514 = sst [smem:[#allocation2_spill]] %s2496_s0 }
   0x2   :  { %2515 = sst [smem:[#allocation3_spill]] %s2497_s1 }
   0x3 LB: > { %s1753_s25 = sadd.s32 4294967295, %s2111_s24   ;;  %p1757_p0 = scmp.ge.s32.totalorder %s2111_s24, 1  ;;  %s2111_s24 = sphi %s2206_s24, %s28_s24  }
   0x4   : > { %p513_p1 = scmp.lt.s32.totalorder %s2111_s24, 3 }
   0x6   : > { %p514_p2 = pnand %p1757_p0, %p513_p1 }
   0x7   : > { %s1758_s28 = sshll.u32 (!%p514_p2), %s1753_s25, 1  ;;  %s2516_s26 = sld [smem:[#allocation2_spill]] (!%p514_p2) }
   0x8   : > { %517 = sbr.rel (%p514_p2) target bundleno = 1846 (0x736), region = 84  ;;  %p581_p3 = scmp.lt.s32.totalorder (!%p514_p2), %s1758_s28, 3 }
   0x9   : > { %s2115_s21 = smov (!%p514_p2), 4  }
   0xd   : > { %v667_v0 = vld [vmem:[%s2504_s8] sm:$0x3]  ;;  %vm677_vm0 = vcmask 1041408   ;;  %v2113_v1 = vmov 0.0   ;;  %vm2114_vm1 = vmmov 0   ;;  %s2519_s28 = smov (!%p581_p3, %s1758_s28), 3 }
   0xe   : > { %1925 = vmatprep.subr.bf16.mxu0 %v2113_v1  ;;  %v679_v2 = vsel %vm677_vm0, %v667_v0, 0  ;;  %1927 = vmatprep.mubr.msk.bf16.mxu0 %vm2114_vm1, %v2113_v1  ;;  %v666_v3 = vld [vmem:[%s2503_s7] sm:$0x3]  ;;  %vm673_vm2 = vcmask 31744   ;;  %s2233_s19 = sshll.u32 %s2519_s28, 3  ;;  %s1763_s1 = sshll.u32 %s2519_s28, 2 }
   0xf   : > { %1926 = vmatpush3.bf16.msra.mxu0 %v679_v2  ;;  %1931 = vmatprep.subr.bf16.mxu1 %v2113_v1  ;;  %v726_v4 = vsel %vm677_vm0, %v666_v3, 0  ;;  %v1768_v5 = vld [vmem:[%s2499_s3] ss:$0 sm:$0xff]  ;;  %s596_s22 = scalar_lea.vmem %s2498_s2, %s1763_s1  ;;  %s584_s27 = scalar_lea.vmem %s2516_s26, %s2233_s19  ;;  %v2057_v19 = vld [vmem:[%s2506_s10 + $0x18] sm:$0xff]   ;;  %v2058_v20 = vld [vmem:[%s2506_s10 + $0x10] sm:$0xff]   ;;  %vm824_vm7 = vcmask 523264  }
  0x10   : > { %1932 = vmatpush3.bf16.msra.mxu1 %v726_v4  ;;  %1933 = vmatprep.mubr.msk.bf16.mxu1 %vm2114_vm1, %v2113_v1  ;;  %v1769_v6 = vld [vmem:[%s2500_s4] ss:$0 sm:$0xff]  ;;  %v612_v9 = vld [vmem:[%s584_s27 + $0x8] sm:$0xff]  ;;  %v2061_v23 = vld [vmem:[%s2506_s10 + $0x38] sm:$0xff]   ;;  %s2517_s26 = sld [smem:[#allocation3_spill]]  ;;  %s602_s25 = scalar_lea.vmem %s2512_s16, %s2233_s19 }
  0x11   : > { %1937 = vmatprep.subr.bf16.mxu0 %v2113_v1  ;;  %1949 = vmatprep.subr.bf16.mxu1 %v2113_v1  ;;  %v2245_v7 = vld [vmem:[%s596_s22] sm:$0xff]   ;;  %v626_v11 = vadd.f32 %v1768_v5, %v612_v9  ;;  %v2059_v21 = vld [vmem:[%s2506_s10 + $0x8] sm:$0xff]   ;;  %v2062_v42 = vld [vmem:[%s2506_s10 + $0x30] sm:$0xff]   ;;  %s608_s29 = scalar_lea.vmem %s2513_s17, %s2233_s19 }
  0x12   : > { %v611_v8 = vld [vmem:[%s584_s27] sm:$0xff]  ;;  %1928 = vmatmul.mubr.msk.bf16.vlgmr.msra.gmra.mxu0 %vm673_vm2, %v2245_v7  ;;  %v2063_v43 = vld [vmem:[%s2506_s10 + $0x28] sm:$0xff]   ;;  %v2065_v45 = vld [vmem:[%s2508_s12 + $0x18] sm:$0xff]  }
  0x13   : > { %v625_v10 = vadd.f32 %v1768_v5, %v611_v8  ;;  %1945 = vmatprep.mubr.msk.bf16.mxu0 %vm2114_vm1, %v2113_v1  ;;  %v634_v13 = vmul.f32 %v1769_v6, %v626_v11  ;;  %1938 = vmatpush3.bf16.msra.mxu0 %v2057_v19  ;;  %v2060_v22 = vld [vmem:[%s2506_s10] sm:$0xff]   ;;  %v2066_v57 = vld [vmem:[%s2510_s14 + $0x18] sm:$0xff]   ;;  %v2067_v59 = vld [vmem:[%s2508_s12 + $0x10] sm:$0xff]  }
  0x14   : > { %1939 = vmatprep.subr.bf16.mxu0 %v2113_v1  ;;  %v1775_v29 = vld [vmem:[%s2505_s9] ss:$0 sm:$0xff]  ;;  %v2068_v60 = vld [vmem:[%s2510_s14 + $0x10] sm:$0xff]   ;;  %v2069_v61 = vld [vmem:[%s2508_s12 + $0x8] sm:$0xff]  }
  0x15   : > { %v633_v12 = vmul.f32 %v1769_v6, %v625_v10  ;;  %vm636_vm4 = vcmp.ge.f32.partialorder %v634_v13, 0.0  ;;  %v638_v15 = vmul.f32 0.9, %v634_v13  ;;  %v2064_v44 = vld [vmem:[%s2506_s10 + $0x20] sm:$0xff]   ;;  %v2070_v62 = vld [vmem:[%s2510_s14 + $0x8] sm:$0xff]  }
  0x16   : > { %v1776_v46 = vld [vmem:[%s2507_s11] ss:$0 sm:$0xff]  ;;  %v1791_v2 = vld [vmem:[%s2507_s11 + $0x1] ss:$0 sm:$0xff]  ;;  %v1809_v19 = vld [vmem:[%s2503_s7 + $0x2] sm:$0x3]  ;;  %s590_s27 = scalar_lea.vmem %s2517_s26, %s2233_s19 }
  0x17   : > { %vm635_vm3 = vcmp.ge.f32.partialorder %v633_v12, 0.0  ;;  %v637_v14 = vmul.f32 0.9, %v633_v12  ;;  %v2253_v17 = vsel %vm636_vm4, %v634_v13, %v638_v15  ;;  %1940 = vmatpush3.bf16.msra.mxu0 %v2058_v20  ;;  %v2071_v63 = vld [vmem:[%s2508_s12] sm:$0xff]   ;;  %v1194_v20 = vsel %vm677_vm0, %v1809_v19, 0 }
  0x18   : > { %1941 = vmatprep.subr.bf16.mxu0 %v2113_v1  ;;  %v2072_v0 = vld [vmem:[%s2510_s14] sm:$0xff]  }
  0x19   : > { %v2251_v16 = vsel %vm635_vm3, %v633_v12, %v637_v14  ;;  %v1810_v15 = vld [vmem:[%s2504_s8 + $0x2] sm:$0x3] }
  0x1a   : > { %v665_v18 = vpack.c.bf16 %v2253_v17, %v2251_v16 }
  0x1b   : > { %1942 = vmatpush3.bf16.msra.mxu0 %v2059_v21  ;;  %v2073_v21 = vld [vmem:[%s2506_s10 + $0x58] sm:$0xff]  }
  0x1c   : > { %1934 = vmatmul.mubr.msk.bf16.vlgmr.msra.gmra.mxu1 %vm673_vm2, %v665_v18  ;;  %1943 = vmatprep.subr.bf16.mxu0 %v2113_v1  ;;  %v1147_v18 = vsel %vm677_vm0, %v1810_v15, 0 }
  0x1d   : > { %1957 = vmatprep.mubr.msk.bf16.mxu1 %vm2114_vm1, %v2113_v1  ;;  %1950 = vmatpush3.bf16.msra.mxu1 %v2061_v23 }
  0x1e   : > { %1951 = vmatprep.subr.bf16.mxu1 %v2113_v1 }
  0x1f   : > { %1944 = vmatpush3.bf16.msra.mxu0 %v2060_v22 }
  0x20   : > { %1961 = vmatprep.subr.bf16.mxu0 %v2113_v1 }
  0x21   : > { %1952 = vmatpush3.bf16.msra.mxu1 %v2062_v42 }
  0x22   : > { %1953 = vmatprep.subr.bf16.mxu1 %v2113_v1 }
  0x25   : > { %1954 = vmatpush3.bf16.msra.mxu1 %v2063_v43 }
  0x26   : > { %1955 = vmatprep.subr.bf16.mxu1 %v2113_v1 }
  0x29   : > { %1956 = vmatpush3.bf16.msra.mxu1 %v2064_v44 }
  0x2a   : > { %1973 = vmatprep.subr.bf16.mxu1 %v2113_v1 }
  0xd2   : > { %v715_v24 = vpop.f32.mrf.mxu0 }
  0xd4   : > { %v1929_v25 = vpop.f32.mrf.mxu0 }
  0xd6   : > { %v718_v26 = vpop.f32.mrf.mxu0 }
  0xd8   : > { %v1930_v27 = vpop.f32.mrf.mxu0 }
  0xdc   : > { %v762_v28 = vpop.f32.mrf.mxu1 }
  0xdd   : > { %v763_v30 = vadd.f32 %v762_v28, %v715_v24 }
  0xde   : > { %v1935_v31 = vpop.f32.mrf.mxu1 }
  0xdf   : > { %v776_v32 = vadd.f32 %v1775_v29, %v763_v30 }
  0xe0   : > { %v765_v33 = vpop.f32.mrf.mxu1 }
  0xe1   : > { %v766_v34 = vadd.f32 %v765_v33, %v718_v26  ;;  %v780_v36 = vmul.f32 0.01, %v776_v32  ;;  %vm778_vm5 = vcmp.ge.f32.partialorder %v776_v32, 0.0 }
  0xe2   : > { %v1936_v35 = vpop.f32.mrf.mxu1 }
  0xe3   : > { %v777_v37 = vadd.f32 %v1775_v29, %v766_v34  ;;  %v782_v39 = vsel %vm778_vm5, %v776_v32, %v780_v36  ;;  %v613_v34 = vld [vmem:[%s590_s27] sm:$0xff]  ;;  %v614_v36 = vld [vmem:[%s590_s27 + $0x8] sm:$0xff]  ;;  %vm1625_vm5 = vcmask 64512  }
  0xe4   : > { %v1770_v35 = vld [vmem:[%s2501_s5] ss:$0 sm:$0xff] }
  0xe5   : > { %vm779_vm6 = vcmp.ge.f32.partialorder %v777_v37, 0.0  ;;  %v781_v38 = vmul.f32 0.01, %v777_v37 }
  0xe7   : > { %v783_v40 = vsel %vm779_vm6, %v777_v37, %v781_v38  ;;  %v649_v38 = vadd.f32 %v1770_v35, %v613_v34  ;;  %vm1636_vm6 = vcmask 7168  }
  0xe8   : > { %v784_v41 = vpack.c.bf16 %v783_v40, %v782_v39  ;;  %v1771_v39 = vld [vmem:[%s2502_s6] ss:$0 sm:$0xff] }
  0xe9   : > { %v657_v42 = vmul.f32 %v1771_v39, %v649_v38  ;;  %v2083_v38 = vld [vmem:[%s2508_s12 + $0x30] sm:$0xff]  }
  0xea   : > { %1946 = vmatmul.mubr.msk.bf16.vlgmr.msra.gmra.mxu0 %vm824_vm7, %v784_v41  ;;  %v650_v41 = vadd.f32 %v1770_v35, %v614_v36  ;;  %v2082_v35 = vld [vmem:[%s2510_s14 + $0x38] sm:$0xff]  }
  0xeb   : > { %1969 = vmatprep.mubr.msk.bf16.mxu0 %vm2114_vm1, %v2113_v1  ;;  %1962 = vmatpush3.bf16.msra.mxu0 %v2065_v45  ;;  %v661_v44 = vmul.f32 0.9, %v657_v42  ;;  %vm659_vm12 = vcmp.ge.f32.partialorder %v657_v42, 0.0 }
  0xec   : > { %1963 = vmatprep.subr.bf16.mxu0 %v2113_v1  ;;  %v658_v43 = vmul.f32 %v1771_v39, %v650_v41  ;;  %v2084_v39 = vld [vmem:[%s2510_s14 + $0x30] sm:$0xff]   ;;  %v2086_v41 = vld [vmem:[%s2510_s14 + $0x28] sm:$0xff]  }
  0xee   : > { %v662_v45 = vmul.f32 0.9, %v658_v43  ;;  %vm660_vm13 = vcmp.ge.f32.partialorder %v658_v43, 0.0 }
  0xef   : > { %1964 = vmatpush3.bf16.msra.mxu0 %v2067_v59 }
  0xf0   : > { %1965 = vmatprep.subr.bf16.mxu0 %v2113_v1 }
  0xf3   : > { %1966 = vmatpush3.bf16.msra.mxu0 %v2069_v61 }
  0xf4   : > { %1967 = vmatprep.subr.bf16.mxu0 %v2113_v1 }
  0xf7   : > { %1968 = vmatpush3.bf16.msra.mxu0 %v2071_v63  ;;  %v2075_v63 = vld [vmem:[%s2506_s10 + $0x48] sm:$0xff]  }
  0xf8   : > { %1985 = vmatprep.subr.bf16.mxu0 %v2113_v1 }
 0x1aa   : > { %v862_v47 = vpop.f32.mrf.mxu0 }
 0x1ab   : > { %v863_v48 = vadd.f32 %v1776_v46, %v862_v47  ;;  %v663_v47 = vsel %vm659_vm12, %v657_v42, %v661_v44  ;;  %v2087_v42 = vld [vmem:[%s2508_s12 + $0x20] sm:$0xff]  }
 0x1ac   : > { %v1947_v49 = vpop.f32.mrf.mxu0  ;;  %v1839_v44 = vld [vmem:[%s2507_s11 + $0x3] ss:$0 sm:$0xff] }
 0x1ad   : > { %v871_v51 = vmul.f32 0.01, %v863_v48  ;;  %vm869_vm8 = vcmp.ge.f32.partialorder %v863_v48, 0.0  ;;  %v664_v49 = vsel %vm660_vm13, %v658_v43, %v662_v45  ;;  %v2088_v43 = vld [vmem:[%s2510_s14 + $0x20] sm:$0xff]  }
 0x1ae   : > { %v865_v50 = vpop.f32.mrf.mxu0 }
 0x1af   : > { %v866_v52 = vadd.f32 %v1776_v46, %v865_v50  ;;  %v873_v55 = vsel %vm869_vm8, %v863_v48, %v871_v51  ;;  %v1803_v48 = vld [vmem:[%s2511_s15] ss:$0 sm:$0xff] }
 0x1b0   : > { %v1948_v53 = vpop.f32.mrf.mxu0 }
 0x1b1   : > { %vm870_vm9 = vcmp.ge.f32.partialorder %v866_v52, 0.0  ;;  %v872_v54 = vmul.f32 0.01, %v866_v52 }
 0x1b3   : > { %v874_v56 = vsel %vm870_vm9, %v866_v52, %v872_v54 }
 0x1b4   : > { %v875_v58 = vpack.c.bf16 %v874_v56, %v873_v55 }
 0x1b6   : > { %1958 = vmatmul.mubr.msk.bf16.vlgmr.msra.gmra.mxu1 %vm824_vm7, %v875_v58 }
 0x1b7   : > { %1974 = vmatpush3.bf16.msra.mxu1 %v2066_v57  ;;  %1981 = vmatprep.mubr.msk.bf16.mxu1 %vm2114_vm1, %v2113_v1 }
 0x1b8   : > { %1975 = vmatprep.subr.bf16.mxu1 %v2113_v1 }
 0x1bb   : > { %1976 = vmatpush3.bf16.msra.mxu1 %v2068_v60 }
 0x1bc   : > { %1977 = vmatprep.subr.bf16.mxu1 %v2113_v1 }
 0x1bf   : > { %1978 = vmatpush3.bf16.msra.mxu1 %v2070_v62  ;;  %v2074_v62 = vld [vmem:[%s2506_s10 + $0x50] sm:$0xff]  }
 0x1c0   : > { %1979 = vmatprep.subr.bf16.mxu1 %v2113_v1 }
 0x1c3   : > { %1980 = vmatpush3.bf16.msra.mxu1 %v2072_v0  ;;  %v2076_v0 = vld [vmem:[%s2506_s10 + $0x40] sm:$0xff]  }
 0x1c4   : > { %1991 = vmatprep.subr.bf16.mxu1 %v2113_v1 }
 0x276   : > { %v954_v3 = vpop.f32.mrf.mxu1 }
 0x277   : > { %v955_v4 = vadd.f32 %v1791_v2, %v954_v3 }
 0x278   : > { %v1959_v5 = vpop.f32.mrf.mxu1 }
 0x279   : > { %v963_v8 = vmul.f32 0.01, %v955_v4  ;;  %vm961_vm10 = vcmp.ge.f32.partialorder %v955_v4, 0.0 }
 0x27a   : > { %v957_v6 = vpop.f32.mrf.mxu1 }
 0x27b   : > { %v958_v9 = vadd.f32 %v1791_v2, %v957_v6  ;;  %v965_v12 = vsel %vm961_vm10, %v955_v4, %v963_v8  ;;  %v2077_v2 = vld [vmem:[%s2506_s10 + $0x78] sm:$0xff]   ;;  %v1814_v4 = vld [vmem:[%s2505_s9 + $0x1] ss:$0 sm:$0xff] }
 0x27c   : > { %v1960_v10 = vpop.f32.mrf.mxu1 }
 0x27d   : > { %vm962_vm11 = vcmp.ge.f32.partialorder %v958_v9, 0.0  ;;  %v964_v11 = vmul.f32 0.01, %v958_v9 }
 0x27f   : > { %v966_v13 = vsel %vm962_vm11, %v958_v9, %v964_v11 }
 0x280   : > { %v967_v14 = vpack.c.bf16 %v966_v13, %v965_v12 }
 0x282   : > { %1970 = vmatmul.mubr.msk.bf16.vlgmr.msra.gmra.mxu0 %vm824_vm7, %v967_v14  ;;  %1982 = vmatmul.mubr.msk.bf16.vlgmr.msra.gmra.mxu1 %vm824_vm7, %v967_v14 }
 0x283   : > { %1987 = vmatprep.mubr.msk.bf16.mxu0 %vm2114_vm1, %v2113_v1  ;;  %1993 = vmatprep.mubr.msk.bf16.mxu1 %vm2114_vm1, %v2113_v1 }
 0x284   : > { %1986 = vmatpush3.bf16.msra.mxu0 %v1147_v18  ;;  %1992 = vmatpush3.bf16.msra.mxu1 %v1194_v20  ;;  %v2078_v20 = vld [vmem:[%s2506_s10 + $0x70] sm:$0xff]  }
 0x285   : > { %1997 = vmatprep.subr.bf16.mxu0 %v2113_v1  ;;  %2009 = vmatprep.subr.bf16.mxu1 %v2113_v1 }
 0x28a   : > { %1988 = vmatmul.mubr.msk.bf16.vlgmr.msra.gmra.mxu0 %vm673_vm2, %v2245_v7  ;;  %v1797_v7 = vld [vmem:[%s2509_s13] ss:$0 sm:$0xff] }
 0x28b   : > { %2005 = vmatprep.mubr.msk.bf16.mxu0 %vm2114_vm1, %v2113_v1  ;;  %1998 = vmatpush3.bf16.msra.mxu0 %v2073_v21  ;;  %v2079_v21 = vld [vmem:[%s2506_s10 + $0x68] sm:$0xff]  }
 0x28c   : > { %1999 = vmatprep.subr.bf16.mxu0 %v2113_v1 }
 0x28f   : > { %2000 = vmatpush3.bf16.msra.mxu0 %v2074_v62 }
 0x290   : > { %2001 = vmatprep.subr.bf16.mxu0 %v2113_v1 }
 0x293   : > { %2002 = vmatpush3.bf16.msra.mxu0 %v2075_v63 }
 0x294   : > { %2003 = vmatprep.subr.bf16.mxu0 %v2113_v1 }
 0x297   : > { %2004 = vmatpush3.bf16.msra.mxu0 %v2076_v0 }
 0x298   : > { %2021 = vmatprep.subr.bf16.mxu0 %v2113_v1 }
 0x342   : > { %v1044_v22 = vpop.f32.mrf.mxu0  ;;  %v1126_v23 = vpop.f32.mrf.mxu1 }
 0x343   : > { %v1045_v24 = vadd.f32 %v1797_v7, %v1044_v22  ;;  %v1127_v52 = vadd.f32 %v1803_v48, %v1126_v23  ;;  %v2081_v22 = vld [vmem:[%s2508_s12 + $0x38] sm:$0xff]   ;;  %v1824_v23 = vld [vmem:[%s2507_s11 + $0x2] ss:$0 sm:$0xff] }
 0x344   : > { %v1971_v25 = vpop.f32.mrf.mxu0  ;;  %v1983_v26 = vpop.f32.mrf.mxu1 }
 0x345   : > { %2089 = vtanh.f32 %v1045_v24 }
 0x346   : > { %v1047_v27 = vpop.f32.mrf.mxu0  ;;  %v1129_v28 = vpop.f32.mrf.mxu1 }
 0x347   : > { %v1048_v29 = vadd.f32 %v1797_v7, %v1047_v27  ;;  %v1130_v53 = vadd.f32 %v1803_v48, %v1129_v28  ;;  %v2080_v7 = vld [vmem:[%s2506_s10 + $0x60] sm:$0xff]  }
 0x348   : > { %v1972_v30 = vpop.f32.mrf.mxu0  ;;  %v1984_v31 = vpop.f32.mrf.mxu1 }
 0x349   : > { %2091 = vtanh.f32 %v1048_v29 }
 0x34a   : > { %v1183_v58 = vpop.f32.mrf.mxu0 }
 0x34c   : > { %v1989_v59 = vpop.f32.mrf.mxu0 }
 0x34e   : > { %v1186_v60 = vpop.f32.mrf.mxu0 }
 0x350   : > { %v1990_v61 = vpop.f32.mrf.mxu0 }
 0x352   : > { %v2370_v32 = vpop.eup %2089 }
 0x353   : > { %v1133_v33 = vmul.f32 1.442695, %v2370_v32 }
 0x355   : > { %2093 = vpow2.f32 %v1133_v33 }
 0x356   : > { %v2376_v37 = vpop.eup %2091 }
 0x357   : > { %v1135_v40 = vmul.f32 1.442695, %v2376_v37 }
 0x359   : > { %2095 = vpow2.f32 %v1135_v40  ;;  %v2085_v40 = vld [vmem:[%s2508_s12 + $0x28] sm:$0xff]  }
 0x362   : > { %v2094_v46 = vpop.eup %2093 }
 0x363   : > { %v1137_v50 = vmul.f32 %v2094_v46, %v663_v47 }
 0x365   : > { %v2385_v55 = vadd.f32 %v1137_v50, %v1127_v52 }
 0x366   : > { %v2096_v51 = vpop.eup %2095 }
 0x367   : > { %v1138_v54 = vmul.f32 %v2096_v51, %v664_v49 }
 0x369   : > { %v2387_v56 = vadd.f32 %v1138_v54, %v1130_v53 }
 0x36b   : > { %v1141_v57 = vpack.c.bf16 %v2387_v56, %v2385_v55 }
 0x36d   : > { %1994 = vmatmul.mubr.msk.bf16.vlgmr.msra.gmra.mxu1 %vm673_vm2, %v1141_v57  ;;  %v1854_v57 = vld [vmem:[%s2509_s13 + $0x1] ss:$0 sm:$0xff] }
 0x36e   : > { %2017 = vmatprep.mubr.msk.bf16.mxu1 %vm2114_vm1, %v2113_v1  ;;  %2010 = vmatpush3.bf16.msra.mxu1 %v2077_v2 }
 0x36f   : > { %2011 = vmatprep.subr.bf16.mxu1 %v2113_v1 }
 0x372   : > { %2012 = vmatpush3.bf16.msra.mxu1 %v2078_v20 }
 0x373   : > { %2013 = vmatprep.subr.bf16.mxu1 %v2113_v1 }
 0x376   : > { %2014 = vmatpush3.bf16.msra.mxu1 %v2079_v21 }
 0x377   : > { %2015 = vmatprep.subr.bf16.mxu1 %v2113_v1 }
 0x37a   : > { %2016 = vmatpush3.bf16.msra.mxu1 %v2080_v7 }
 0x37b   : > { %2033 = vmatprep.subr.bf16.mxu1 %v2113_v1 }
 0x42d   : > { %v1230_v3 = vpop.f32.mrf.mxu1 }
 0x42e   : > { %v1231_v5 = vadd.f32 %v1230_v3, %v1183_v58 }
 0x42f   : > { %v1995_v6 = vpop.f32.mrf.mxu1 }
 0x430   : > { %v1245_v8 = vadd.f32 %v1814_v4, %v1231_v5 }
 0x431   : > { %v1233_v9 = vpop.f32.mrf.mxu1 }
 0x432   : > { %v1234_v10 = vadd.f32 %v1233_v9, %v1186_v60  ;;  %v1249_v12 = vmul.f32 0.01, %v1245_v8  ;;  %vm1247_vm14 = vcmp.ge.f32.partialorder %v1245_v8, 0.0 }
 0x433   : > { %v1996_v11 = vpop.f32.mrf.mxu1 }
 0x434   : > { %v1246_v13 = vadd.f32 %v1814_v4, %v1234_v10  ;;  %v1251_v15 = vsel %vm1247_vm14, %v1245_v8, %v1249_v12 }
 0x436   : > { %vm1248_vm15 = vcmp.ge.f32.partialorder %v1246_v13, 0.0  ;;  %v1250_v14 = vmul.f32 0.01, %v1246_v13 }
 0x438   : > { %v1252_v18 = vsel %vm1248_vm15, %v1246_v13, %v1250_v14  ;;  %v1869_v14 = vld [vmem:[%s2511_s15 + $0x1] ss:$0 sm:$0xff] }
 0x439   : > { %v1253_v19 = vpack.c.bf16 %v1252_v18, %v1251_v15 }
 0x43b   : > { %2006 = vmatmul.mubr.msk.bf16.vlgmr.msra.gmra.mxu0 %vm824_vm7, %v1253_v19 }
 0x43c   : > { %2029 = vmatprep.mubr.msk.bf16.mxu0 %vm2114_vm1, %v2113_v1  ;;  %2022 = vmatpush3.bf16.msra.mxu0 %v2081_v22 }
 0x43d   : > { %2023 = vmatprep.subr.bf16.mxu0 %v2113_v1 }
 0x440   : > { %2024 = vmatpush3.bf16.msra.mxu0 %v2083_v38 }
 0x441   : > { %2025 = vmatprep.subr.bf16.mxu0 %v2113_v1 }
 0x444   : > { %2026 = vmatpush3.bf16.msra.mxu0 %v2085_v40 }
 0x445   : > { %2027 = vmatprep.subr.bf16.mxu0 %v2113_v1 }
 0x448   : > { %2028 = vmatpush3.bf16.msra.mxu0 %v2087_v42 }
 0x4fb   : > { %v1332_v24 = vpop.f32.mrf.mxu0 }
 0x4fc   : > { %v1333_v25 = vadd.f32 %v1824_v23, %v1332_v24 }
 0x4fd   : > { %v2007_v26 = vpop.f32.mrf.mxu0 }
 0x4fe   : > { %v1341_v28 = vmul.f32 0.01, %v1333_v25  ;;  %vm1339_vm0 = vcmp.ge.f32.partialorder %v1333_v25, 0.0 }
 0x4ff   : > { %v1335_v27 = vpop.f32.mrf.mxu0 }
 0x500   : > { %v1336_v29 = vadd.f32 %v1824_v23, %v1335_v27  ;;  %v1343_v33 = vsel %vm1339_vm0, %v1333_v25, %v1341_v28 }
 0x501   : > { %v2008_v30 = vpop.f32.mrf.mxu0 }
 0x502   : > { %vm1340_vm3 = vcmp.ge.f32.partialorder %v1336_v29, 0.0  ;;  %v1342_v31 = vmul.f32 0.01, %v1336_v29 }
 0x504   : > { %v1344_v34 = vsel %vm1340_vm3, %v1336_v29, %v1342_v31 }
 0x505   : > { %v1345_v36 = vpack.c.bf16 %v1344_v34, %v1343_v33 }
 0x507   : > { %2018 = vmatmul.mubr.msk.bf16.vlgmr.msra.gmra.mxu1 %vm824_vm7, %v1345_v36 }
 0x508   : > { %2034 = vmatpush3.bf16.msra.mxu1 %v2082_v35  ;;  %2041 = vmatprep.mubr.msk.bf16.mxu1 %vm2114_vm1, %v2113_v1 }
 0x509   : > { %2035 = vmatprep.subr.bf16.mxu1 %v2113_v1 }
 0x50c   : > { %2036 = vmatpush3.bf16.msra.mxu1 %v2084_v39 }
 0x50d   : > { %2037 = vmatprep.subr.bf16.mxu1 %v2113_v1 }
 0x510   : > { %2038 = vmatpush3.bf16.msra.mxu1 %v2086_v41 }
 0x511   : > { %2039 = vmatprep.subr.bf16.mxu1 %v2113_v1 }
 0x514   : > { %2040 = vmatpush3.bf16.msra.mxu1 %v2088_v43 }
 0x5c7   : > { %v1424_v45 = vpop.f32.mrf.mxu1 }
 0x5c8   : > { %v1425_v46 = vadd.f32 %v1839_v44, %v1424_v45 }
 0x5c9   : > { %v2019_v47 = vpop.f32.mrf.mxu1 }
 0x5ca   : > { %v1433_v49 = vmul.f32 0.01, %v1425_v46  ;;  %vm1431_vm1 = vcmp.ge.f32.partialorder %v1425_v46, 0.0 }
 0x5cb   : > { %v1427_v48 = vpop.f32.mrf.mxu1 }
 0x5cc   : > { %v1428_v1 = vadd.f32 %v1839_v44, %v1427_v48  ;;  %v1435_v52 = vsel %vm1431_vm1, %v1425_v46, %v1433_v49 }
 0x5cd   : > { %v2020_v50 = vpop.f32.mrf.mxu1 }
 0x5ce   : > { %vm1432_vm4 = vcmp.ge.f32.partialorder %v1428_v1, 0.0  ;;  %v1434_v51 = vmul.f32 0.01, %v1428_v1 }
 0x5d0   : > { %v1436_v53 = vsel %vm1432_vm4, %v1428_v1, %v1434_v51 }
 0x5d1   : > { %v1437_v54 = vpack.c.bf16 %v1436_v53, %v1435_v52 }
 0x5d3   : > { %2030 = vmatmul.mubr.msk.bf16.vlgmr.msra.gmra.mxu0 %vm824_vm7, %v1437_v54  ;;  %2042 = vmatmul.mubr.msk.bf16.vlgmr.msra.gmra.mxu1 %vm824_vm7, %v1437_v54 }
 0x693   : > { %v1516_v58 = vpop.f32.mrf.mxu0  ;;  %v1600_v59 = vpop.f32.mrf.mxu1 }
 0x694   : > { %v1517_v60 = vadd.f32 %v1854_v57, %v1516_v58  ;;  %v1601_v18 = vadd.f32 %v1869_v14, %v1600_v59 }
 0x695   : > { %v2031_v61 = vpop.f32.mrf.mxu0  ;;  %v2043_v62 = vpop.f32.mrf.mxu1 }
 0x696   : > { %2097 = vtanh.f32 %v1517_v60 }
 0x697   : > { %v1519_v63 = vpop.f32.mrf.mxu0  ;;  %v1603_v0 = vpop.f32.mrf.mxu1 }
 0x698   : > { %v1520_v2 = vadd.f32 %v1854_v57, %v1519_v63  ;;  %v1604_v21 = vadd.f32 %v1869_v14, %v1603_v0 }
 0x699   : > { %v2032_v3 = vpop.f32.mrf.mxu0  ;;  %v2044_v4 = vpop.f32.mrf.mxu1 }
 0x69a   : > { %2099 = vtanh.f32 %v1520_v2 }
 0x6a3   : > { %v2098_v5 = vpop.eup %2097 }
 0x6a4   : > { %v1607_v6 = vmul.f32 1.442695, %v2098_v5  ;;  %v1628_v8 = vadd.f32 %v2098_v5, %v2370_v32 }
 0x6a6   : > { %2101 = vpow2.f32 %v1607_v6  ;;  %v1630_v9 = vsel %vm673_vm2, %v1628_v8, 0.0 }
 0x6a7   : > { %v2100_v10 = vpop.eup %2099  ;;  %1631 = vadd.xlane.f32.xlu0 %v1630_v9 }
 0x6a8   : > { %v1609_v11 = vmul.f32 1.442695, %v2100_v10  ;;  %v1629_v12 = vadd.f32 %v2100_v10, %v2376_v37 }
 0x6aa   : > { %2103 = vpow2.f32 %v1609_v11  ;;  %v1633_v13 = vsel %vm673_vm2, %v1629_v12, 0.0 }
 0x6ab   : > { %1634 = vadd.xlane.f32.xlu0 %v1633_v13 }
 0x6b3   : > { %v2102_v15 = vpop.eup %2101 }
 0x6b4   : > { %v1611_v32 = vmul.f32 %v2102_v15, %v2251_v16 }
 0x6b6   : > { %v1613_v19 = vadd.f32 %v1611_v32, %v1601_v18 }
 0x6b7   : > { %v2104_v20 = vpop.eup %2103 }
 0x6b8   : > { %v1612_v7 = vmul.f32 %v2104_v20, %v2253_v17  ;;  %1617 = vrot.lane.b32.xlu1 %v1613_v19, %s2115_s21 }
 0x6ba   : > { %v1614_v37 = vadd.f32 %v1612_v7, %v1604_v21 }
 0x6bc   : > { %1619 = vrot.lane.b32.xlu1 %v1614_v37, %s2115_s21 }
 0x72a   : > { %v1618_v22 = vpop.permute.xlu1 %1617 }
 0x72b   : > { %v1623_v23 = vsel %vm673_vm2, %v2385_v55, %v1618_v22 }
 0x72c   : > { %1626 = vst.msk [vmem:[%s602_s25] sm:$0xff] %vm1625_vm5, %v1623_v23 }
 0x72e   : > { %v1620_v16 = vpop.permute.xlu1 %1619 }
 0x72f   : > { %v1624_v17 = vsel %vm673_vm2, %v2387_v56, %v1620_v16 }
 0x730   : > { %1627 = vst.msk [vmem:[%s602_s25 + $0x8] sm:$0xff] %vm1625_vm5, %v1624_v17  ;;  %v1632_v24 = vpop.xlane.xlu0 %1631 }
 0x731   : > { %1637 = vst.msk [vmem:[%s608_s29] sm:$0xff] %vm1636_vm6, %v1632_v24 }
 0x734   : > { %v1635_v25 = vpop.xlane.xlu0 %1634 }
 0x735   : > { %1638 = vst.msk [vmem:[%s608_s29 + $0x8] sm:$0xff] %vm1636_vm6, %v1635_v25 }
 0x736 PF: > { %s28_s24 = sadd.s32 1, %s2111_s24  }
 0x737   : > { %p25_p4 = scmp.ge.s32.totalorder %s28_s24, 4  }
 0x739   :  { %27 = sbr.rel (!%p25_p4) target bundleno = 3 (0x3), region = 145 }

// kernel: tpu_custom_call.1
= control target key start
LH: loop header
LB: loop body
LE: loop exit
PB: predicated region body
PF: predicated region fallthrough
CT: control target
= control target key end

     0   :  { %s2206_s24 = smov 0   ;;  %s2496_s0 = inlined_call_operand.vmem [shape: f32[32,4], index: 0, kind: input, shape index: {}]   ;;  %s2497_s1 = inlined_call_operand.vmem [shape: f32[32,4], index: 1, kind: input, shape index: {}]   ;;  %s2498_s2 = inlined_call_operand.vmem [shape: bf16[32,4], index: 2, kind: input, shape index: {}]   ;;  %s2499_s3 = inlined_call_operand.vmem [shape: f32[1,4], index: 3, kind: input, shape index: {}]   ;;  %s2500_s4 = inlined_call_operand.vmem [shape: f32[1,4], index: 4, kind: input, shape index: {}]   ;;  %s2501_s5 = inlined_call_operand.vmem [shape: f32[1,4], index: 5, kind: input, shape index: {}]   ;;  %s2502_s6 = inlined_call_operand.vmem [shape: f32[1,4], index: 6, kind: input, shape index: {}]   ;;  %s2503_s7 = inlined_call_operand.vmem [shape: bf16[2,4,64], index: 7, kind: input, shape index: {}]   ;;  %s2504_s8 = inlined_call_operand.vmem [shape: bf16[2,4,64], index: 8, kind: input, shape index: {}]   ;;  %s2505_s9 = inlined_call_operand.vmem [shape: f32[2,1,64], index: 9, kind: input, shape index: {}]   ;;  %s2506_s10 = inlined_call_operand.vmem [shape: bf16[4,64,64], index: 10, kind: input, shape index: {}]   ;;  %s2507_s11 = inlined_call_operand.vmem [shape: f32[4,1,64], index: 11, kind: input, shape index: {}]   ;;  %s2508_s12 = inlined_call_operand.vmem [shape: bf16[2,64,4], index: 12, kind: input, shape index: {}]   ;;  %s2509_s13 = inlined_call_operand.vmem [shape: f32[2,1,4], index: 13, kind: input, shape index: {}]   ;;  %s2510_s14 = inlined_call_operand.vmem [shape: bf16[2,64,4], index: 14, kind: input, shape index: {}]   ;;  %s2511_s15 = inlined_call_operand.vmem [shape: f32[2,1,4], index: 15, kind: input, shape index: {}]   ;;  %s2512_s16 = inlined_call_operand.vmem [shape: f32[32,8], index: 16, kind: output, shape index: {0}]   ;;  %s2513_s17 = inlined_call_operand.vmem [shape: f32[32,1], index: 17, kind: output, shape index: {1}]  }
   0x1   :  { %2514 = sst [smem:[#allocation2_spill]] %s2496_s0 }
   0x2   :  { %2515 = sst [smem:[#allocation3_spill]] %s2497_s1 }
   0x3 LB: > { %s1753_s25 = sadd.s32 4294967295, %s2111_s24   ;;  %p1757_p0 = scmp.ge.s32.totalorder %s2111_s24, 1  ;;  %s2111_s24 = sphi %s2206_s24, %s28_s24  }
   0x4   : > { %p513_p1 = scmp.lt.s32.totalorder %s2111_s24, 3 }
   0x6   : > { %p514_p2 = pnand %p1757_p0, %p513_p1 }
   0x7   : > { %s1758_s28 = sshll.u32 (!%p514_p2), %s1753_s25, 1  ;;  %s2516_s26 = sld [smem:[#allocation2_spill]] (!%p514_p2) }
   0x8   : > { %517 = sbr.rel (%p514_p2) target bundleno = 1846 (0x736), region = 84  ;;  %p581_p3 = scmp.lt.s32.totalorder (!%p514_p2), %s1758_s28, 3 }
   0x9   : > { %s2115_s21 = smov (!%p514_p2), 4  }
   0xd   : > { %v667_v0 = vld [vmem:[%s2504_s8] sm:$0x3]  ;;  %vm677_vm0 = vcmask 1041408   ;;  %v2113_v1 = vmov 0.0   ;;  %vm2114_vm1 = vmmov 0   ;;  %s2519_s28 = smov (!%p581_p3, %s1758_s28), 3 }
   0xe   : > { %1925 = vmatprep.subr.bf16.mxu0 %v2113_v1  ;;  %v679_v2 = vsel %vm677_vm0, %v667_v0, 0  ;;  %1927 = vmatprep.mubr.msk.bf16.mxu0 %vm2114_vm1, %v2113_v1  ;;  %v666_v3 = vld [vmem:[%s2503_s7] sm:$0x3]  ;;  %vm673_vm2 = vcmask 31744   ;;  %s2233_s19 = sshll.u32 %s2519_s28, 3  ;;  %s1763_s1 = sshll.u32 %s2519_s28, 2 }
   0xf   : > { %1926 = vmatpush3.bf16.msra.mxu0 %v679_v2  ;;  %1931 = vmatprep.subr.bf16.mxu1 %v2113_v1  ;;  %v726_v4 = vsel %vm677_vm0, %v666_v3, 0  ;;  %v1768_v5 = vld [vmem:[%s2499_s3] ss:$0 sm:$0xff]  ;;  %s596_s22 = scalar_lea.vmem %s2498_s2, %s1763_s1  ;;  %s584_s27 = scalar_lea.vmem %s2516_s26, %s2233_s19  ;;  %v2057_v19 = vld [vmem:[%s2506_s10 + $0x18] sm:$0xff]   ;;  %v2058_v20 = vld [vmem:[%s2506_s10 + $0x10] sm:$0xff]   ;;  %vm824_vm7 = vcmask 523264  }
  0x10   : > { %1932 = vmatpush3.bf16.msra.mxu1 %v726_v4  ;;  %1933 = vmatprep.mubr.msk.bf16.mxu1 %vm2114_vm1, %v2113_v1  ;;  %v1769_v6 = vld [vmem:[%s2500_s4] ss:$0 sm:$0xff]  ;;  %v612_v9 = vld [vmem:[%s584_s27 + $0x8] sm:$0xff]  ;;  %v2061_v23 = vld [vmem:[%s2506_s10 + $0x38] sm:$0xff]   ;;  %s2517_s26 = sld [smem:[#allocation3_spill]]  ;;  %s602_s25 = scalar_lea.vmem %s2512_s16, %s2233_s19 }
  0x11   : > { %1937 = vmatprep.subr.bf16.mxu0 %v2113_v1  ;;  %1949 = vmatprep.subr.bf16.mxu1 %v2113_v1  ;;  %v2245_v7 = vld [vmem:[%s596_s22] sm:$0xff]   ;;  %v626_v11 = vadd.f32 %v1768_v5, %v612_v9  ;;  %v2059_v21 = vld [vmem:[%s2506_s10 + $0x8] sm:$0xff]   ;;  %v2062_v42 = vld [vmem:[%s2506_s10 + $0x30] sm:$0xff]   ;;  %s608_s29 = scalar_lea.vmem %s2513_s17, %s2233_s19 }
  0x12   : > { %v611_v8 = vld [vmem:[%s584_s27] sm:$0xff]  ;;  %1928 = vmatmul.mubr.msk.bf16.vlgmr.msra.gmra.mxu0 %vm673_vm2, %v2245_v7  ;;  %v2063_v43 = vld [vmem:[%s2506_s10 + $0x28] sm:$0xff]   ;;  %v2065_v45 = vld [vmem:[%s2508_s12 + $0x18] sm:$0xff]  }
  0x13   : > { %v625_v10 = vadd.f32 %v1768_v5, %v611_v8  ;;  %1945 = vmatprep.mubr.msk.bf16.mxu0 %vm2114_vm1, %v2113_v1  ;;  %v634_v13 = vmul.f32 %v1769_v6, %v626_v11  ;;  %1938 = vmatpush3.bf16.msra.mxu0 %v2057_v19  ;;  %v2060_v22 = vld [vmem:[%s2506_s10] sm:$0xff]   ;;  %v2066_v57 = vld [vmem:[%s2510_s14 + $0x18] sm:$0xff]   ;;  %v2067_v59 = vld [vmem:[%s2508_s12 + $0x10] sm:$0xff]  }
  0x14   : > { %1939 = vmatprep.subr.bf16.mxu0 %v2113_v1  ;;  %v1775_v29 = vld [vmem:[%s2505_s9] ss:$0 sm:$0xff]  ;;  %v2068_v60 = vld [vmem:[%s2510_s14 + $0x10] sm:$0xff]   ;;  %v2069_v61 = vld [vmem:[%s2508_s12 + $0x8] sm:$0xff]  }
  0x15   : > { %v633_v12 = vmul.f32 %v1769_v6, %v625_v10  ;;  %vm636_vm4 = vcmp.ge.f32.partialorder %v634_v13, 0.0  ;;  %v638_v15 = vmul.f32 0.9, %v634_v13  ;;  %v2064_v44 = vld [vmem:[%s2506_s10 + $0x20] sm:$0xff]   ;;  %v2070_v62 = vld [vmem:[%s2510_s14 + $0x8] sm:$0xff]  }
  0x16   : > { %v1776_v46 = vld [vmem:[%s2507_s11] ss:$0 sm:$0xff]  ;;  %v1791_v2 = vld [vmem:[%s2507_s11 + $0x1] ss:$0 sm:$0xff]  ;;  %v1809_v19 = vld [vmem:[%s2503_s7 + $0x2] sm:$0x3]  ;;  %s590_s27 = scalar_lea.vmem %s2517_s26, %s2233_s19 }
  0x17   : > { %vm635_vm3 = vcmp.ge.f32.partialorder %v633_v12, 0.0  ;;  %v637_v14 = vmul.f32 0.9, %v633_v12  ;;  %v2253_v17 = vsel %vm636_vm4, %v634_v13, %v638_v15  ;;  %1940 = vmatpush3.bf16.msra.mxu0 %v2058_v20  ;;  %v2071_v63 = vld [vmem:[%s2508_s12] sm:$0xff]   ;;  %v1194_v20 = vsel %vm677_vm0, %v1809_v19, 0 }
  0x18   : > { %1941 = vmatprep.subr.bf16.mxu0 %v2113_v1  ;;  %v2072_v0 = vld [vmem:[%s2510_s14] sm:$0xff]  }
  0x19   : > { %v2251_v16 = vsel %vm635_vm3, %v633_v12, %v637_v14  ;;  %v1810_v15 = vld [vmem:[%s2504_s8 + $0x2] sm:$0x3] }
  0x1a   : > { %v665_v18 = vpack.c.bf16 %v2253_v17, %v2251_v16 }
  0x1b   : > { %1942 = vmatpush3.bf16.msra.mxu0 %v2059_v21  ;;  %v2073_v21 = vld [vmem:[%s2506_s10 + $0x58] sm:$0xff]  }
  0x1c   : > { %1934 = vmatmul.mubr.msk.bf16.vlgmr.msra.gmra.mxu1 %vm673_vm2, %v665_v18  ;;  %1943 = vmatprep.subr.bf16.mxu0 %v2113_v1  ;;  %v1147_v18 = vsel %vm677_vm0, %v1810_v15, 0 }
  0x1d   : > { %1957 = vmatprep.mubr.msk.bf16.mxu1 %vm2114_vm1, %v2113_v1  ;;  %1950 = vmatpush3.bf16.msra.mxu1 %v2061_v23 }
  0x1e   : > { %1951 = vmatprep.subr.bf16.mxu1 %v2113_v1 }
  0x1f   : > { %1944 = vmatpush3.bf16.msra.mxu0 %v2060_v22 }
  0x20   : > { %1961 = vmatprep.subr.bf16.mxu0 %v2113_v1 }
  0x21   : > { %1952 = vmatpush3.bf16.msra.mxu1 %v2062_v42 }
  0x22   : > { %1953 = vmatprep.subr.bf16.mxu1 %v2113_v1 }
  0x25   : > { %1954 = vmatpush3.bf16.msra.mxu1 %v2063_v43 }
  0x26   : > { %1955 = vmatprep.subr.bf16.mxu1 %v2113_v1 }
  0x29   : > { %1956 = vmatpush3.bf16.msra.mxu1 %v2064_v44 }
  0x2a   : > { %1973 = vmatprep.subr.bf16.mxu1 %v2113_v1 }
  0xd2   : > { %v715_v24 = vpop.f32.mrf.mxu0 }
  0xd4   : > { %v1929_v25 = vpop.f32.mrf.mxu0 }
  0xd6   : > { %v718_v26 = vpop.f32.mrf.mxu0 }
  0xd8   : > { %v1930_v27 = vpop.f32.mrf.mxu0 }
  0xdc   : > { %v762_v28 = vpop.f32.mrf.mxu1 }
  0xdd   : > { %v763_v30 = vadd.f32 %v762_v28, %v715_v24 }
  0xde   : > { %v1935_v31 = vpop.f32.mrf.mxu1 }
  0xdf   : > { %v776_v32 = vadd.f32 %v1775_v29, %v763_v30 }
  0xe0   : > { %v765_v33 = vpop.f32.mrf.mxu1 }
  0xe1   : > { %v766_v34 = vadd.f32 %v765_v33, %v718_v26  ;;  %v780_v36 = vmul.f32 0.01, %v776_v32  ;;  %vm778_vm5 = vcmp.ge.f32.partialorder %v776_v32, 0.0 }
  0xe2   : > { %v1936_v35 = vpop.f32.mrf.mxu1 }
  0xe3   : > { %v777_v37 = vadd.f32 %v1775_v29, %v766_v34  ;;  %v782_v39 = vsel %vm778_vm5, %v776_v32, %v780_v36  ;;  %v613_v34 = vld [vmem:[%s590_s27] sm:$0xff]  ;;  %v614_v36 = vld [vmem:[%s590_s27 + $0x8] sm:$0xff]  ;;  %vm1625_vm5 = vcmask 64512  }
  0xe4   : > { %v1770_v35 = vld [vmem:[%s2501_s5] ss:$0 sm:$0xff] }
  0xe5   : > { %vm779_vm6 = vcmp.ge.f32.partialorder %v777_v37, 0.0  ;;  %v781_v38 = vmul.f32 0.01, %v777_v37 }
  0xe7   : > { %v783_v40 = vsel %vm779_vm6, %v777_v37, %v781_v38  ;;  %v649_v38 = vadd.f32 %v1770_v35, %v613_v34  ;;  %vm1636_vm6 = vcmask 7168  }
  0xe8   : > { %v784_v41 = vpack.c.bf16 %v783_v40, %v782_v39  ;;  %v1771_v39 = vld [vmem:[%s2502_s6] ss:$0 sm:$0xff] }
  0xe9   : > { %v657_v42 = vmul.f32 %v1771_v39, %v649_v38  ;;  %v2083_v38 = vld [vmem:[%s2508_s12 + $0x30] sm:$0xff]  }
  0xea   : > { %1946 = vmatmul.mubr.msk.bf16.vlgmr.msra.gmra.mxu0 %vm824_vm7, %v784_v41  ;;  %v650_v41 = vadd.f32 %v1770_v35, %v614_v36  ;;  %v2082_v35 = vld [vmem:[%s2510_s14 + $0x38] sm:$0xff]  }
  0xeb   : > { %1969 = vmatprep.mubr.msk.bf16.mxu0 %vm2114_vm1, %v2113_v1  ;;  %1962 = vmatpush3.bf16.msra.mxu0 %v2065_v45  ;;  %v661_v44 = vmul.f32 0.9, %v657_v42  ;;  %vm659_vm12 = vcmp.ge.f32.partialorder %v657_v42, 0.0 }
  0xec   : > { %1963 = vmatprep.subr.bf16.mxu0 %v2113_v1  ;;  %v658_v43 = vmul.f32 %v1771_v39, %v650_v41  ;;  %v2084_v39 = vld [vmem:[%s2510_s14 + $0x30] sm:$0xff]   ;;  %v2086_v41 = vld [vmem:[%s2510_s14 + $0x28] sm:$0xff]  }
  0xee   : > { %v662_v45 = vmul.f32 0.9, %v658_v43  ;;  %vm660_vm13 = vcmp.ge.f32.partialorder %v658_v43, 0.0 }
  0xef   : > { %1964 = vmatpush3.bf16.msra.mxu0 %v2067_v59 }
  0xf0   : > { %1965 = vmatprep.subr.bf16.mxu0 %v2113_v1 }
  0xf3   : > { %1966 = vmatpush3.bf16.msra.mxu0 %v2069_v61 }
  0xf4   : > { %1967 = vmatprep.subr.bf16.mxu0 %v2113_v1 }
  0xf7   : > { %1968 = vmatpush3.bf16.msra.mxu0 %v2071_v63  ;;  %v2075_v63 = vld [vmem:[%s2506_s10 + $0x48] sm:$0xff]  }
  0xf8   : > { %1985 = vmatprep.subr.bf16.mxu0 %v2113_v1 }
 0x1aa   : > { %v862_v47 = vpop.f32.mrf.mxu0 }
 0x1ab   : > { %v863_v48 = vadd.f32 %v1776_v46, %v862_v47  ;;  %v663_v47 = vsel %vm659_vm12, %v657_v42, %v661_v44  ;;  %v2087_v42 = vld [vmem:[%s2508_s12 + $0x20] sm:$0xff]  }
 0x1ac   : > { %v1947_v49 = vpop.f32.mrf.mxu0  ;;  %v1839_v44 = vld [vmem:[%s2507_s11 + $0x3] ss:$0 sm:$0xff] }
 0x1ad   : > { %v871_v51 = vmul.f32 0.01, %v863_v48  ;;  %vm869_vm8 = vcmp.ge.f32.partialorder %v863_v48, 0.0  ;;  %v664_v49 = vsel %vm660_vm13, %v658_v43, %v662_v45  ;;  %v2088_v43 = vld [vmem:[%s2510_s14 + $0x20] sm:$0xff]  }
 0x1ae   : > { %v865_v50 = vpop.f32.mrf.mxu0 }
 0x1af   : > { %v866_v52 = vadd.f32 %v1776_v46, %v865_v50  ;;  %v873_v55 = vsel %vm869_vm8, %v863_v48, %v871_v51  ;;  %v1803_v48 = vld [vmem:[%s2511_s15] ss:$0 sm:$0xff] }
 0x1b0   : > { %v1948_v53 = vpop.f32.mrf.mxu0 }
 0x1b1   : > { %vm870_vm9 = vcmp.ge.f32.partialorder %v866_v52, 0.0  ;;  %v872_v54 = vmul.f32 0.01, %v866_v52 }
 0x1b3   : > { %v874_v56 = vsel %vm870_vm9, %v866_v52, %v872_v54 }
 0x1b4   : > { %v875_v58 = vpack.c.bf16 %v874_v56, %v873_v55 }
 0x1b6   : > { %1958 = vmatmul.mubr.msk.bf16.vlgmr.msra.gmra.mxu1 %vm824_vm7, %v875_v58 }
 0x1b7   : > { %1974 = vmatpush3.bf16.msra.mxu1 %v2066_v57  ;;  %1981 = vmatprep.mubr.msk.bf16.mxu1 %vm2114_vm1, %v2113_v1 }
 0x1b8   : > { %1975 = vmatprep.subr.bf16.mxu1 %v2113_v1 }
 0x1bb   : > { %1976 = vmatpush3.bf16.msra.mxu1 %v2068_v60 }
 0x1bc   : > { %1977 = vmatprep.subr.bf16.mxu1 %v2113_v1 }
 0x1bf   : > { %1978 = vmatpush3.bf16.msra.mxu1 %v2070_v62  ;;  %v2074_v62 = vld [vmem:[%s2506_s10 + $0x50] sm:$0xff]  }
 0x1c0   : > { %1979 = vmatprep.subr.bf16.mxu1 %v2113_v1 }
 0x1c3   : > { %1980 = vmatpush3.bf16.msra.mxu1 %v2072_v0  ;;  %v2076_v0 = vld [vmem:[%s2506_s10 + $0x40] sm:$0xff]  }
 0x1c4   : > { %1991 = vmatprep.subr.bf16.mxu1 %v2113_v1 }
 0x276   : > { %v954_v3 = vpop.f32.mrf.mxu1 }
 0x277   : > { %v955_v4 = vadd.f32 %v1791_v2, %v954_v3 }
 0x278   : > { %v1959_v5 = vpop.f32.mrf.mxu1 }
 0x279   : > { %v963_v8 = vmul.f32 0.01, %v955_v4  ;;  %vm961_vm10 = vcmp.ge.f32.partialorder %v955_v4, 0.0 }
 0x27a   : > { %v957_v6 = vpop.f32.mrf.mxu1 }
 0x27b   : > { %v958_v9 = vadd.f32 %v1791_v2, %v957_v6  ;;  %v965_v12 = vsel %vm961_vm10, %v955_v4, %v963_v8  ;;  %v2077_v2 = vld [vmem:[%s2506_s10 + $0x78] sm:$0xff]   ;;  %v1814_v4 = vld [vmem:[%s2505_s9 + $0x1] ss:$0 sm:$0xff] }
 0x27c   : > { %v1960_v10 = vpop.f32.mrf.mxu1 }
 0x27d   : > { %vm962_vm11 = vcmp.ge.f32.partialorder %v958_v9, 0.0  ;;  %v964_v11 = vmul.f32 0.01, %v958_v9 }
 0x27f   : > { %v966_v13 = vsel %vm962_vm11, %v958_v9, %v964_v11 }
 0x280   : > { %v967_v14 = vpack.c.bf16 %v966_v13, %v965_v12 }
 0x282   : > { %1970 = vmatmul.mubr.msk.bf16.vlgmr.msra.gmra.mxu0 %vm824_vm7, %v967_v14  ;;  %1982 = vmatmul.mubr.msk.bf16.vlgmr.msra.gmra.mxu1 %vm824_vm7, %v967_v14 }
 0x283   : > { %1987 = vmatprep.mubr.msk.bf16.mxu0 %vm2114_vm1, %v2113_v1  ;;  %1993 = vmatprep.mubr.msk.bf16.mxu1 %vm2114_vm1, %v2113_v1 }
 0x284   : > { %1986 = vmatpush3.bf16.msra.mxu0 %v1147_v18  ;;  %1992 = vmatpush3.bf16.msra.mxu1 %v1194_v20  ;;  %v2078_v20 = vld [vmem:[%s2506_s10 + $0x70] sm:$0xff]  }
 0x285   : > { %1997 = vmatprep.subr.bf16.mxu0 %v2113_v1  ;;  %2009 = vmatprep.subr.bf16.mxu1 %v2113_v1 }
 0x28a   : > { %1988 = vmatmul.mubr.msk.bf16.vlgmr.msra.gmra.mxu0 %vm673_vm2, %v2245_v7  ;;  %v1797_v7 = vld [vmem:[%s2509_s13] ss:$0 sm:$0xff] }
 0x28b   : > { %2005 = vmatprep.mubr.msk.bf16.mxu0 %vm2114_vm1, %v2113_v1  ;;  %1998 = vmatpush3.bf16.msra.mxu0 %v2073_v21  ;;  %v2079_v21 = vld [vmem:[%s2506_s10 + $0x68] sm:$0xff]  }
 0x28c   : > { %1999 = vmatprep.subr.bf16.mxu0 %v2113_v1 }
 0x28f   : > { %2000 = vmatpush3.bf16.msra.mxu0 %v2074_v62 }
 0x290   : > { %2001 = vmatprep.subr.bf16.mxu0 %v2113_v1 }
 0x293   : > { %2002 = vmatpush3.bf16.msra.mxu0 %v2075_v63 }
 0x294   : > { %2003 = vmatprep.subr.bf16.mxu0 %v2113_v1 }
 0x297   : > { %2004 = vmatpush3.bf16.msra.mxu0 %v2076_v0 }
 0x298   : > { %2021 = vmatprep.subr.bf16.mxu0 %v2113_v1 }
 0x342   : > { %v1044_v22 = vpop.f32.mrf.mxu0  ;;  %v1126_v23 = vpop.f32.mrf.mxu1 }
 0x343   : > { %v1045_v24 = vadd.f32 %v1797_v7, %v1044_v22  ;;  %v1127_v52 = vadd.f32 %v1803_v48, %v1126_v23  ;;  %v2081_v22 = vld [vmem:[%s2508_s12 + $0x38] sm:$0xff]   ;;  %v1824_v23 = vld [vmem:[%s2507_s11 + $0x2] ss:$0 sm:$0xff] }
 0x344   : > { %v1971_v25 = vpop.f32.mrf.mxu0  ;;  %v1983_v26 = vpop.f32.mrf.mxu1 }
 0x345   : > { %2089 = vtanh.f32 %v1045_v24 }
 0x346   : > { %v1047_v27 = vpop.f32.mrf.mxu0  ;;  %v1129_v28 = vpop.f32.mrf.mxu1 }
 0x347   : > { %v1048_v29 = vadd.f32 %v1797_v7, %v1047_v27  ;;  %v1130_v53 = vadd.f32 %v1803_v48, %v1129_v28  ;;  %v2080_v7 = vld [vmem:[%s2506_s10 + $0x60] sm:$0xff]  }
 0x348   : > { %v1972_v30 = vpop.f32.mrf.mxu0  ;;  %v1984_v31 = vpop.f32.mrf.mxu1 }
 0x349   : > { %2091 = vtanh.f32 %v1048_v29 }
 0x34a   : > { %v1183_v58 = vpop.f32.mrf.mxu0 }
 0x34c   : > { %v1989_v59 = vpop.f32.mrf.mxu0 }
 0x34e   : > { %v1186_v60 = vpop.f32.mrf.mxu0 }
 0x350   : > { %v1990_v61 = vpop.f32.mrf.mxu0 }
 0x352   : > { %v2370_v32 = vpop.eup %2089 }
 0x353   : > { %v1133_v33 = vmul.f32 1.442695, %v2370_v32 }
 0x355   : > { %2093 = vpow2.f32 %v1133_v33 }
 0x356   : > { %v2376_v37 = vpop.eup %2091 }
 0x357   : > { %v1135_v40 = vmul.f32 1.442695, %v2376_v37 }
 0x359   : > { %2095 = vpow2.f32 %v1135_v40  ;;  %v2085_v40 = vld [vmem:[%s2508_s12 + $0x28] sm:$0xff]  }
 0x362   : > { %v2094_v46 = vpop.eup %2093 }
 0x363   : > { %v1137_v50 = vmul.f32 %v2094_v46, %v663_v47 }
 0x365   : > { %v2385_v55 = vadd.f32 %v1137_v50, %v1127_v52 }
 0x366   : > { %v2096_v51 = vpop.eup %2095 }
 0x367   : > { %v1138_v54 = vmul.f32 %v2096_v51, %v664_v49 }
 0x369   : > { %v2387_v56 = vadd.f32 %v1138_v54, %v1130_v53 }
 0x36b   : > { %v1141_v57 = vpack.c.bf16 %v2387_v56, %v2385_v55 }
 0x36d   : > { %1994 = vmatmul.mubr.msk.bf16.vlgmr.msra.gmra.mxu1 %vm673_vm2, %v1141_v57  ;;  %v1854_v57 = vld [vmem:[%s2509_s13 + $0x1] ss:$0 sm:$0xff] }
 0x36e   : > { %2017 = vmatprep.mubr.msk.bf16.mxu1 %vm2114_vm1, %v2113_v1  ;;  %2010 = vmatpush3.bf16.msra.mxu1 %v2077_v2 }
 0x36f   : > { %2011 = vmatprep.subr.bf16.mxu1 %v2113_v1 }
 0x372   : > { %2012 = vmatpush3.bf16.msra.mxu1 %v2078_v20 }
 0x373   : > { %2013 = vmatprep.subr.bf16.mxu1 %v2113_v1 }
 0x376   : > { %2014 = vmatpush3.bf16.msra.mxu1 %v2079_v21 }
 0x377   : > { %2015 = vmatprep.subr.bf16.mxu1 %v2113_v1 }
 0x37a   : > { %2016 = vmatpush3.bf16.msra.mxu1 %v2080_v7 }
 0x37b   : > { %2033 = vmatprep.subr.bf16.mxu1 %v2113_v1 }
 0x42d   : > { %v1230_v3 = vpop.f32.mrf.mxu1 }
 0x42e   : > { %v1231_v5 = vadd.f32 %v1230_v3, %v1183_v58 }
 0x42f   : > { %v1995_v6 = vpop.f32.mrf.mxu1 }
 0x430   : > { %v1245_v8 = vadd.f32 %v1814_v4, %v1231_v5 }
 0x431   : > { %v1233_v9 = vpop.f32.mrf.mxu1 }
 0x432   : > { %v1234_v10 = vadd.f32 %v1233_v9, %v1186_v60  ;;  %v1249_v12 = vmul.f32 0.01, %v1245_v8  ;;  %vm1247_vm14 = vcmp.ge.f32.partialorder %v1245_v8, 0.0 }
 0x433   : > { %v1996_v11 = vpop.f32.mrf.mxu1 }
 0x434   : > { %v1246_v13 = vadd.f32 %v1814_v4, %v1234_v10  ;;  %v1251_v15 = vsel %vm1247_vm14, %v1245_v8, %v1249_v12 }
 0x436   : > { %vm1248_vm15 = vcmp.ge.f32.partialorder %v1246_v13, 0.0  ;;  %v1250_v14 = vmul.f32 0.01, %v1246_v13 }
 0x438   : > { %v1252_v18 = vsel %vm1248_vm15, %v1246_v13, %v1250_v14  ;;  %v1869_v14 = vld [vmem:[%s2511_s15 + $0x1] ss:$0 sm:$0xff] }
 0x439   : > { %v1253_v19 = vpack.c.bf16 %v1252_v18, %v1251_v15 }
 0x43b   : > { %2006 = vmatmul.mubr.msk.bf16.vlgmr.msra.gmra.mxu0 %vm824_vm7, %v1253_v19 }
 0x43c   : > { %2029 = vmatprep.mubr.msk.bf16.mxu0 %vm2114_vm1, %v2113_v1  ;;  %2022 = vmatpush3.bf16.msra.mxu0 %v2081_v22 }
 0x43d   : > { %2023 = vmatprep.subr.bf16.mxu0 %v2113_v1 }
 0x440   : > { %2024 = vmatpush3.bf16.msra.mxu0 %v2083_v38 }
 0x441   : > { %2025 = vmatprep.subr.bf16.mxu0 %v2113_v1 }
 0x444   : > { %2026 = vmatpush3.bf16.msra.mxu0 %v2085_v40 }
 0x445   : > { %2027 = vmatprep.subr.bf16.mxu0 %v2113_v1 }
 0x448   : > { %2028 = vmatpush3.bf16.msra.mxu0 %v2087_v42 }
 0x4fb   : > { %v1332_v24 = vpop.f32.mrf.mxu0 }
 0x4fc   : > { %v1333_v25 = vadd.f32 %v1824_v23, %v1332_v24 }
 0x4fd   : > { %v2007_v26 = vpop.f32.mrf.mxu0 }
 0x4fe   : > { %v1341_v28 = vmul.f32 0.01, %v1333_v25  ;;  %vm1339_vm0 = vcmp.ge.f32.partialorder %v1333_v25, 0.0 }
 0x4ff   : > { %v1335_v27 = vpop.f32.mrf.mxu0 }
 0x500   : > { %v1336_v29 = vadd.f32 %v1824_v23, %v1335_v27  ;;  %v1343_v33 = vsel %vm1339_vm0, %v1333_v25, %v1341_v28 }
 0x501   : > { %v2008_v30 = vpop.f32.mrf.mxu0 }
 0x502   : > { %vm1340_vm3 = vcmp.ge.f32.partialorder %v1336_v29, 0.0  ;;  %v1342_v31 = vmul.f32 0.01, %v1336_v29 }
 0x504   : > { %v1344_v34 = vsel %vm1340_vm3, %v1336_v29, %v1342_v31 }
 0x505   : > { %v1345_v36 = vpack.c.bf16 %v1344_v34, %v1343_v33 }
 0x507   : > { %2018 = vmatmul.mubr.msk.bf16.vlgmr.msra.gmra.mxu1 %vm824_vm7, %v1345_v36 }
 0x508   : > { %2034 = vmatpush3.bf16.msra.mxu1 %v2082_v35  ;;  %2041 = vmatprep.mubr.msk.bf16.mxu1 %vm2114_vm1, %v2113_v1 }
 0x509   : > { %2035 = vmatprep.subr.bf16.mxu1 %v2113_v1 }
 0x50c   : > { %2036 = vmatpush3.bf16.msra.mxu1 %v2084_v39 }
 0x50d   : > { %2037 = vmatprep.subr.bf16.mxu1 %v2113_v1 }
 0x510   : > { %2038 = vmatpush3.bf16.msra.mxu1 %v2086_v41 }
 0x511   : > { %2039 = vmatprep.subr.bf16.mxu1 %v2113_v1 }
 0x514   : > { %2040 = vmatpush3.bf16.msra.mxu1 %v2088_v43 }
 0x5c7   : > { %v1424_v45 = vpop.f32.mrf.mxu1 }
 0x5c8   : > { %v1425_v46 = vadd.f32 %v1839_v44, %v1424_v45 }
 0x5c9   : > { %v2019_v47 = vpop.f32.mrf.mxu1 }
 0x5ca   : > { %v1433_v49 = vmul.f32 0.01, %v1425_v46  ;;  %vm1431_vm1 = vcmp.ge.f32.partialorder %v1425_v46, 0.0 }
 0x5cb   : > { %v1427_v48 = vpop.f32.mrf.mxu1 }
 0x5cc   : > { %v1428_v1 = vadd.f32 %v1839_v44, %v1427_v48  ;;  %v1435_v52 = vsel %vm1431_vm1, %v1425_v46, %v1433_v49 }
 0x5cd   : > { %v2020_v50 = vpop.f32.mrf.mxu1 }
 0x5ce   : > { %vm1432_vm4 = vcmp.ge.f32.partialorder %v1428_v1, 0.0  ;;  %v1434_v51 = vmul.f32 0.01, %v1428_v1 }
 0x5d0   : > { %v1436_v53 = vsel %vm1432_vm4, %v1428_v1, %v1434_v51 }
 0x5d1   : > { %v1437_v54 = vpack.c.bf16 %v1436_v53, %v1435_v52 }
 0x5d3   : > { %2030 = vmatmul.mubr.msk.bf16.vlgmr.msra.gmra.mxu0 %vm824_vm7, %v1437_v54  ;;  %2042 = vmatmul.mubr.msk.bf16.vlgmr.msra.gmra.mxu1 %vm824_vm7, %v1437_v54 }
 0x693   : > { %v1516_v58 = vpop.f32.mrf.mxu0  ;;  %v1600_v59 = vpop.f32.mrf.mxu1 }
 0x694   : > { %v1517_v60 = vadd.f32 %v1854_v57, %v1516_v58  ;;  %v1601_v18 = vadd.f32 %v1869_v14, %v1600_v59 }
 0x695   : > { %v2031_v61 = vpop.f32.mrf.mxu0  ;;  %v2043_v62 = vpop.f32.mrf.mxu1 }
 0x696   : > { %2097 = vtanh.f32 %v1517_v60 }
 0x697   : > { %v1519_v63 = vpop.f32.mrf.mxu0  ;;  %v1603_v0 = vpop.f32.mrf.mxu1 }
 0x698   : > { %v1520_v2 = vadd.f32 %v1854_v57, %v1519_v63  ;;  %v1604_v21 = vadd.f32 %v1869_v14, %v1603_v0 }
 0x699   : > { %v2032_v3 = vpop.f32.mrf.mxu0  ;;  %v2044_v4 = vpop.f32.mrf.mxu1 }
 0x69a   : > { %2099 = vtanh.f32 %v1520_v2 }
 0x6a3   : > { %v2098_v5 = vpop.eup %2097 }
 0x6a4   : > { %v1607_v6 = vmul.f32 1.442695, %v2098_v5  ;;  %v1628_v8 = vadd.f32 %v2098_v5, %v2370_v32 }
 0x6a6   : > { %2101 = vpow2.f32 %v1607_v6  ;;  %v1630_v9 = vsel %vm673_vm2, %v1628_v8, 0.0 }
 0x6a7   : > { %v2100_v10 = vpop.eup %2099  ;;  %1631 = vadd.xlane.f32.xlu0 %v1630_v9 }
 0x6a8   : > { %v1609_v11 = vmul.f32 1.442695, %v2100_v10  ;;  %v1629_v12 = vadd.f32 %v2100_v10, %v2376_v37 }
 0x6aa   : > { %2103 = vpow2.f32 %v1609_v11  ;;  %v1633_v13 = vsel %vm673_vm2, %v1629_v12, 0.0 }
 0x6ab   : > { %1634 = vadd.xlane.f32.xlu0 %v1633_v13 }
 0x6b3   : > { %v2102_v15 = vpop.eup %2101 }
 0x6b4   : > { %v1611_v32 = vmul.f32 %v2102_v15, %v2251_v16 }
 0x6b6   : > { %v1613_v19 = vadd.f32 %v1611_v32, %v1601_v18 }
 0x6b7   : > { %v2104_v20 = vpop.eup %2103 }
 0x6b8   : > { %v1612_v7 = vmul.f32 %v2104_v20, %v2253_v17  ;;  %1617 = vrot.lane.b32.xlu1 %v1613_v19, %s2115_s21 }
 0x6ba   : > { %v1614_v37 = vadd.f32 %v1612_v7, %v1604_v21 }
 0x6bc   : > { %1619 = vrot.lane.b32.xlu1 %v1614_v37, %s2115_s21 }
 0x72a   : > { %v1618_v22 = vpop.permute.xlu1 %1617 }
 0x72b   : > { %v1623_v23 = vsel %vm673_vm2, %v2385_v55, %v1618_v22 }
 0x72c   : > { %1626 = vst.msk [vmem:[%s602_s25] sm:$0xff] %vm1625_vm5, %v1623_v23 }
 0x72e   : > { %v1620_v16 = vpop.permute.xlu1 %1619 }
 0x72f   : > { %v1624_v17 = vsel %vm673_vm2, %v2387_v56, %v1620_v16 }
 0x730   : > { %1627 = vst.msk [vmem:[%s602_s25 + $0x8] sm:$0xff] %vm1625_vm5, %v1624_v17  ;;  %v1632_v24 = vpop.xlane.xlu0 %1631 }
 0x731   : > { %1637 = vst.msk [vmem:[%s608_s29] sm:$0xff] %vm1636_vm6, %v1632_v24 }
 0x734   : > { %v1635_v25 = vpop.xlane.xlu0 %1634 }
 0x735   : > { %1638 = vst.msk [vmem:[%s608_s29 + $0x8] sm:$0xff] %vm1636_vm6, %v1635_v25 }
 0x736 PF: > { %s28_s24 = sadd.s32 1, %s2111_s24  }
 0x737   : > { %p25_p4 = scmp.ge.s32.totalorder %s28_s24, 4  }
 0x739   :  { %27 = sbr.rel (!%p25_p4) target bundleno = 3 (0x3), region = 145 }

</bundles_post_ra>
